<compile_context>
chip_gen: v7x
topology: tpu7x:2x2x1
jax: 0.10.0
libtpu: 0.0.40
codegen_flags: <defaults>
</compile_context>

<pallas_src>
import jax
import jax.numpy as jnp
from jax.experimental import pallas as pl
from jax.experimental.pallas import tpu as pltpu


def _round_up(x, m):
    return ((x + m - 1) // m) * m


def _make_kernel(C, tc, num_c, needs_mask):
    """Online-softmax predictor kernel over class chunks of width tc."""

    def kernel(x_ref, pred_ref, score_ref, m_sc, l_sc, arg_sc):
        j = pl.program_id(1)  # class-chunk index ("arbitrary" reduction axis)

        @pl.when(j == 0)
        def _init():
            m_sc[...] = jnp.full_like(m_sc, -jnp.inf)
            l_sc[...] = jnp.zeros_like(l_sc)
            arg_sc[...] = jnp.zeros_like(arg_sc)

        # Upcast to f32 BEFORE the subtraction (precision for bf16 inputs);
        # the HBM->VMEM DMA stays in the source dtype.
        x = x_ref[...].astype(jnp.float32)                        # (tb, tc)
        col0 = j * tc
        if needs_mask:
            # Ragged last class chunk: lanes >= C hold unspecified data.
            col = col0 + jax.lax.broadcasted_iota(jnp.int32, x.shape, 1)
            x = jnp.where(col < C, x, -jnp.inf)

        # ---- chunk max / argmax (first occurrence within the chunk) --------
        cmax = jnp.max(x, axis=-1, keepdims=True)                 # (tb, 1)
        idx = jax.lax.broadcasted_iota(jnp.int32, x.shape, 1)
        cand = jnp.where(x == cmax, idx, jnp.int32(tc))
        carg = col0 + jnp.min(cand, axis=-1, keepdims=True)       # (tb, 1)

        # ---- online update of running (argmax, max, exp-sum) ----------------
        m_old = m_sc[...]
        # strictly-greater => ties keep the earlier chunk (first occurrence)
        arg_sc[...] = jnp.where(cmax > m_old, carg, arg_sc[...])
        m_new = jnp.maximum(m_old, cmax)
        m_sc[...] = m_new
        alpha = jnp.where(m_old > -jnp.inf, jnp.exp(m_old - m_new), 0.0)
        e = jnp.exp(x - m_new)                                    # masked lanes -> 0
        l_sc[...] = l_sc[...] * alpha + jnp.sum(e, axis=-1, keepdims=True)

        @pl.when(j == num_c - 1)
        def _finish():
            # Single relayout per batch tile into lane-dense (1, tb) outputs.
            pred_ref[...] = arg_sc[...].reshape(1, -1)
            # score = exp(m - m) / sum(exp(x - m)) = 1 / l   (exact divide)
            score_ref[...] = (1.0 / l_sc[...]).reshape(1, -1)

    return kernel


def predictor_forward(logits, *, max_tb=32768, _force_tc=None):
    """logits: [B, C] float array -> (prediction int32 [B], score float32 [B])."""
    B, C = logits.shape
    itemsize = jnp.dtype(logits.dtype).itemsize

    # ---- per-generation VMEM budget ----------------------------------------
    try:
        vmem_cap = pltpu.get_tpu_info().vmem_capacity_bytes
    except Exception:
        vmem_cap = 64 * 1024 * 1024           # conservative (v7x per-TC) default
    if vmem_cap >= 128 * 1024 * 1024:          # v5e / v6e (128 MiB physical)
        vmem_limit = 64 * 1024 * 1024
    else:                                      # v7x (64 MiB physical per TC)
        vmem_limit = (vmem_cap * 3) // 4
    budget = int(vmem_limit * 0.85)            # headroom for outputs / misc

    # ---- class-axis tiling ---------------------------------------------------
    c_lanes = _round_up(C, 128)                # lanes are padded to 128 in VMEM
    if _force_tc is not None:
        tc = int(_force_tc)                    # test/tuning knob (multiple of 128)
    elif c_lanes <= 4096:
        tc = C                                 # single class tile (common case)
    else:
        tc = 4096                              # stream the class axis (vocab-scale C)
    num_c = pl.cdiv(C, tc)
    needs_mask = (C % tc) != 0
    tc_lanes = _round_up(tc, 128)

    # ---- batch-axis tiling: explicit VMEM accounting -------------------------
    N_INPUT_BUFS = 3                           # pl.Buffered(3) on the input stream
    N_TEMPS = 4                                # worst-case live (tb, tc) f32/i32 temps
    row_bytes = (N_INPUT_BUFS * tc_lanes * itemsize     # multi-buffered input tile
                 + N_TEMPS * tc_lanes * 4                # chunk-sized temporaries
                 + 3 * 128 * 4                           # lane-padded (tb,1) scratch x3
                 + 4 * 128 * 4)                          # margin for (tb,1) temporaries
    tb = budget // row_bytes
    tb = min(tb, max_tb, _round_up(B, 128))
    tb = max(128, (tb // 128) * 128)
    num_b = pl.cdiv(B, tb)
    b_out = num_b * tb                         # padded OUTPUT width only (input unpadded)

    kernel = _make_kernel(C, tc, num_c, needs_mask)

    grid = (num_b, num_c)
    out_shape = (jax.ShapeDtypeStruct((1, b_out), jnp.int32),
                 jax.ShapeDtypeStruct((1, b_out), jnp.float32))
    out_specs = (pl.BlockSpec((1, tb), lambda i, j: (0, i)),   # lane-dense outputs,
                 pl.BlockSpec((1, tb), lambda i, j: (0, i)))   # resident across j
    scratch_shapes = [pltpu.VMEM((tb, 1), jnp.float32),        # running max
                      pltpu.VMEM((tb, 1), jnp.float32),        # running exp-sum
                      pltpu.VMEM((tb, 1), jnp.int32)]          # running argmax
    cparams = pltpu.CompilerParams(
        dimension_semantics=("parallel", "arbitrary"),
        vmem_limit_bytes=vmem_limit)

    def _run(in_spec):
        return pl.pallas_call(
            kernel,
            out_shape=out_shape,
            grid=grid,
            in_specs=[in_spec],
            out_specs=out_specs,
            scratch_shapes=scratch_shapes,
            compiler_params=cparams,
        )(logits)

    try:
        # 3-deep input buffering to hide DMA issue latency (helps most on v7x).
        pred, score = _run(pl.BlockSpec((tb, tc), lambda i, j: (i, j),
                                        pipeline_mode=pl.Buffered(3)))
    except Exception:
        # Fallback to default double buffering if multi-buffering is unavailable.
        pred, score = _run(pl.BlockSpec((tb, tc), lambda i, j: (i, j)))

    return pred[0, :B], score[0, :B]


if __name__ == "__main__":
    # Small demo consistent with a classifier predictor: batch of 8, 16 classes.
    key = jax.random.PRNGKey(0)
    B, C = 8, 16
    x = jax.random.normal(key, (B, C), dtype=jnp.float32)

    prediction, score = predictor_forward(x)
    jax.block_until_ready((prediction, score))

    ref_pred = jnp.argmax(x, axis=-1).astype(jnp.int32)
    ref_score = jnp.max(jax.nn.softmax(x, axis=-1), axis=-1)
    assert prediction.shape == (B,) and score.shape == (B,)
    assert bool(jnp.all(prediction == ref_pred)), "prediction mismatch"
    assert bool(jnp.allclose(score, ref_score, atol=1e-5)), "score mismatch"

    # Also exercise the streaming class-axis path at a small shape:
    # force 128-wide class chunks with a masked ragged tail (C=200 -> 2 chunks).
    B2, C2 = 8, 200
    x2 = jax.random.normal(jax.random.PRNGKey(1), (B2, C2), dtype=jnp.float32)
    p2, s2 = predictor_forward(x2, _force_tc=128)
    jax.block_until_ready((p2, s2))
    assert bool(jnp.all(p2 == jnp.argmax(x2, axis=-1).astype(jnp.int32))), \
        "streaming-C prediction mismatch"
    assert bool(jnp.allclose(s2, jnp.max(jax.nn.softmax(x2, axis=-1), axis=-1),
                             atol=1e-5)), "streaming-C score mismatch"

    print("KERNEL_OK")
</pallas_src>

<mosaic_0001>
module attributes {stable_mosaic.version = 11 : i64} {
  func.func @kernel(%arg0: i32, %arg1: i32, %arg2: memref<128x16xf32, #tpu.memory_space<vmem>>, %arg3: memref<1x128xi32, #tpu.memory_space<vmem>>, %arg4: memref<1x128xf32, #tpu.memory_space<vmem>>, %arg5: memref<128x1xf32, #tpu.memory_space<vmem>>, %arg6: memref<128x1xf32, #tpu.memory_space<vmem>>, %arg7: memref<128x1xi32, #tpu.memory_space<vmem>>) attributes {dimension_semantics = [#tpu.dimension_semantics<parallel>, #tpu.dimension_semantics<arbitrary>], iteration_bounds = array<i64: 1, 1>, scalar_prefetch = 0 : i64, scratch_operands = 3 : i64, tpu.core_type = #tpu.core_type<tc>, window_params = [{transform_indices = @transform_0, window_bounds = array<i64: 128, 16>}, {transform_indices = @transform_1, window_bounds = array<i64: 1, 128>}, {transform_indices = @transform_2, window_bounds = array<i64: 1, 128>}]} {
    %c0_i32 = arith.constant 0 : i32
    %0 = arith.cmpi eq, %arg1, %c0_i32 : i32
    %1 = arith.extui %0 : i1 to i32
    %c0_i32_0 = arith.constant 0 : i32
    %2 = arith.cmpi ne, %1, %c0_i32_0 : i32
    scf.if %2 {
      %cst_21 = arith.constant 0xFF800000 : f32
      %41 = vector.broadcast %cst_21 : f32 to vector<128x1xf32>
      %c0_22 = arith.constant 0 : index
      %c0_23 = arith.constant 0 : index
      %42 = vector.load %arg5[%c0_22, %c0_23] : memref<128x1xf32, #tpu.memory_space<vmem>>, vector<128x1xf32>
      tpu.vector_store %arg5[%c0_22, %c0_23], %41 {strides = array<i32>} : memref<128x1xf32, #tpu.memory_space<vmem>>, vector<128x1xf32>,
      %cst_24 = arith.constant 0.000000e+00 : f32
      %43 = vector.broadcast %cst_24 : f32 to vector<128x1xf32>
      %c0_25 = arith.constant 0 : index
      %c0_26 = arith.constant 0 : index
      %44 = vector.load %arg6[%c0_25, %c0_26] : memref<128x1xf32, #tpu.memory_space<vmem>>, vector<128x1xf32>
      tpu.vector_store %arg6[%c0_25, %c0_26], %43 {strides = array<i32>} : memref<128x1xf32, #tpu.memory_space<vmem>>, vector<128x1xf32>,
      %c0_i32_27 = arith.constant 0 : i32
      %45 = vector.broadcast %c0_i32_27 : i32 to vector<128x1xi32>
      %c0_28 = arith.constant 0 : index
      %c0_29 = arith.constant 0 : index
      %46 = vector.load %arg7[%c0_28, %c0_29] : memref<128x1xi32, #tpu.memory_space<vmem>>, vector<128x1xi32>
      tpu.vector_store %arg7[%c0_28, %c0_29], %45 {strides = array<i32>} : memref<128x1xi32, #tpu.memory_space<vmem>>, vector<128x1xi32>,
    } else {
    }
    %c0 = arith.constant 0 : index
    %c0_1 = arith.constant 0 : index
    %3 = vector.load %arg2[%c0, %c0_1] : memref<128x16xf32, #tpu.memory_space<vmem>>, vector<128x16xf32>
    %c16_i32 = arith.constant 16 : i32
    %4 = arith.muli %arg1, %c16_i32 : i32
    %cst = arith.constant dense<0xFF800000> : vector<128xf32>
    %5 = vector.multi_reduction <maximumf>, %3, %cst [1] : vector<128x16xf32> to vector<128xf32>
    %6 = vector.shape_cast %5 : vector<128xf32> to vector<128x1xf32>
    %7 = tpu.iota {dimensions = array<i32: 1>} : vector<128x16xi32>
    %8 = vector.broadcast %6 : vector<128x1xf32> to vector<128x16xf32>
    %9 = arith.cmpf oeq, %3, %8 : vector<128x16xf32>
    %c16_i32_2 = arith.constant 16 : i32
    %10 = vector.broadcast %c16_i32_2 : i32 to vector<128x16xi32>
    %11 = arith.select %9, %7, %10 : vector<128x16xi1>, vector<128x16xi32>
    %cst_3 = arith.constant dense<2147483647> : vector<128xi32>
    %12 = vector.multi_reduction <minsi>, %11, %cst_3 [1] : vector<128x16xi32> to vector<128xi32>
    %13 = vector.shape_cast %12 : vector<128xi32> to vector<128x1xi32>
    %14 = vector.broadcast %4 : i32 to vector<128x1xi32>
    %15 = arith.addi %14, %13 : vector<128x1xi32>
    %c0_4 = arith.constant 0 : index
    %c0_5 = arith.constant 0 : index
    %16 = vector.load %arg5[%c0_4, %c0_5] : memref<128x1xf32, #tpu.memory_space<vmem>>, vector<128x1xf32>
    %17 = arith.cmpf ogt, %6, %16 : vector<128x1xf32>
    %c0_6 = arith.constant 0 : index
    %c0_7 = arith.constant 0 : index
    %18 = vector.load %arg7[%c0_6, %c0_7] : memref<128x1xi32, #tpu.memory_space<vmem>>, vector<128x1xi32>
    %19 = arith.select %17, %15, %18 : vector<128x1xi1>, vector<128x1xi32>
    %c0_8 = arith.constant 0 : index
    %c0_9 = arith.constant 0 : index
    %20 = vector.load %arg7[%c0_8, %c0_9] : memref<128x1xi32, #tpu.memory_space<vmem>>, vector<128x1xi32>
    tpu.vector_store %arg7[%c0_8, %c0_9], %19 {strides = array<i32>} : memref<128x1xi32, #tpu.memory_space<vmem>>, vector<128x1xi32>,
    %21 = arith.maximumf %16, %6 : vector<128x1xf32>
    %c0_10 = arith.constant 0 : index
    %c0_11 = arith.constant 0 : index
    %22 = vector.load %arg5[%c0_10, %c0_11] : memref<128x1xf32, #tpu.memory_space<vmem>>, vector<128x1xf32>
    tpu.vector_store %arg5[%c0_10, %c0_11], %21 {strides = array<i32>} : memref<128x1xf32, #tpu.memory_space<vmem>>, vector<128x1xf32>,
    %cst_12 = arith.constant 0xFF800000 : f32
    %23 = vector.broadcast %cst_12 : f32 to vector<128x1xf32>
    %24 = arith.cmpf ogt, %16, %23 : vector<128x1xf32>
    %25 = arith.subf %16, %21 : vector<128x1xf32>
    %26 = math.exp %25 : vector<128x1xf32>
    %cst_13 = arith.constant 0.000000e+00 : f32
    %27 = vector.broadcast %cst_13 : f32 to vector<128x1xf32>
    %28 = arith.select %24, %26, %27 : vector<128x1xi1>, vector<128x1xf32>
    %29 = vector.broadcast %21 : vector<128x1xf32> to vector<128x16xf32>
    %30 = arith.subf %3, %29 : vector<128x16xf32>
    %31 = math.exp %30 : vector<128x16xf32>
    %c0_14 = arith.constant 0 : index
    %c0_15 = arith.constant 0 : index
    %32 = vector.load %arg6[%c0_14, %c0_15] : memref<128x1xf32, #tpu.memory_space<vmem>>, vector<128x1xf32>
    %33 = arith.mulf %32, %28 : vector<128x1xf32>
    %cst_16 = arith.constant dense<0.000000e+00> : vector<128xf32>
    %34 = vector.multi_reduction <add>, %31, %cst_16 [1] : vector<128x16xf32> to vector<128xf32>
    %35 = vector.shape_cast %34 : vector<128xf32> to vector<128x1xf32>
    %36 = arith.addf %33, %35 : vector<128x1xf32>
    %c0_17 = arith.constant 0 : index
    %c0_18 = arith.constant 0 : index
    %37 = vector.load %arg6[%c0_17, %c0_18] : memref<128x1xf32, #tpu.memory_space<vmem>>, vector<128x1xf32>
    tpu.vector_store %arg6[%c0_17, %c0_18], %36 {strides = array<i32>} : memref<128x1xf32, #tpu.memory_space<vmem>>, vector<128x1xf32>,
    %c0_i32_19 = arith.constant 0 : i32
    %38 = arith.cmpi eq, %arg1, %c0_i32_19 : i32
    %39 = arith.extui %38 : i1 to i32
    %c0_i32_20 = arith.constant 0 : i32
    %40 = arith.cmpi ne, %39, %c0_i32_20 : i32
    scf.if %40 {
      %c0_21 = arith.constant 0 : index
      %c0_22 = arith.constant 0 : index
      %41 = vector.load %arg7[%c0_21, %c0_22] : memref<128x1xi32, #tpu.memory_space<vmem>>, vector<128x1xi32>
      %42 = vector.shape_cast %41 : vector<128x1xi32> to vector<1x128xi32>
      %c0_23 = arith.constant 0 : index
      %c0_24 = arith.constant 0 : index
      %43 = vector.load %arg3[%c0_23, %c0_24] : memref<1x128xi32, #tpu.memory_space<vmem>>, vector<1x128xi32>
      tpu.vector_store %arg3[%c0_23, %c0_24], %42 {strides = array<i32>} : memref<1x128xi32, #tpu.memory_space<vmem>>, vector<1x128xi32>,
      %c0_25 = arith.constant 0 : index
      %c0_26 = arith.constant 0 : index
      %44 = vector.load %arg6[%c0_25, %c0_26] : memref<128x1xf32, #tpu.memory_space<vmem>>, vector<128x1xf32>
      %cst_27 = arith.constant 1.000000e+00 : f32
      %45 = vector.broadcast %cst_27 : f32 to vector<128x1xf32>
      %46 = arith.divf %45, %44 : vector<128x1xf32>
      %47 = vector.shape_cast %46 : vector<128x1xf32> to vector<1x128xf32>
      %c0_28 = arith.constant 0 : index
      %c0_29 = arith.constant 0 : index
      %48 = vector.load %arg4[%c0_28, %c0_29] : memref<1x128xf32, #tpu.memory_space<vmem>>, vector<1x128xf32>
      tpu.vector_store %arg4[%c0_28, %c0_29], %47 {strides = array<i32>} : memref<1x128xf32, #tpu.memory_space<vmem>>, vector<1x128xf32>,
    } else {
    }
    return
  }
  func.func @transform_0(%arg0: i32, %arg1: i32) -> (i32, i32) {
    %c0_i32 = arith.constant 0 : i32
    return %arg0, %arg1 : i32, i32
  }
  func.func @transform_1(%arg0: i32, %arg1: i32) -> (i32, i32) {
    %c0_i32 = arith.constant 0 : i32
    %c0_i32_0 = arith.constant 0 : i32
    return %c0_i32, %arg0 : i32, i32
  }
  func.func @transform_2(%arg0: i32, %arg1: i32) -> (i32, i32) {
    %c0_i32 = arith.constant 0 : i32
    %c0_i32_0 = arith.constant 0 : i32
    return %c0_i32, %arg0 : i32, i32
  }
}

</mosaic_0001>

<bundles_post_ra>
// kernel: tpu_custom_call.1
= control target key start
LH: loop header
LB: loop body
LE: loop exit
PB: predicated region body
PF: predicated region fallthrough
CT: control target
= control target key end

     0   :  { %8 = vsyncpa [#allocation6], 0  ;;  %s2371_s0 = inlined_call_operand.hbm [shape: f32[8,16], index: 0, kind: input, shape index: {}]   ;;  %s2372_s1 = inlined_call_operand.hbm [shape: s32[1,128], index: 1, kind: output, shape index: {0}]   ;;  %s2373_s2 = inlined_call_operand.hbm [shape: f32[1,128], index: 2, kind: output, shape index: {1}]  }
   0x1   :  { %9 = vsyncpa [#allocation7], 0 }
   0x2   :  { %10 = vsyncpa [#allocation10], 0 }
   0x3   :  { %15 = vsyncadd [#allocation6], 1920  ;;  %s1446_s9 = smov [#allocation5]   ;;  %s1374_s13 = scalar_lea.hbm %s2371_s0, 128 }
   0x4   :  { %s16_s10 = sshll.u32 %s1446_s9, 4  ;;  %p1375_p0 = scmp.ne.s32.totalorder %s2371_s0, %s1374_s13  ;;  %s17_s10 = int_to_ptr.vmem [resolvable:$true] %s16_s10 }
   0x5   :  { %p1378_p1 = scmp.lt.u32.totalorder %s1374_s13, %s2371_s0 }
   0x7   :  { %p1380_p2 = pnand %p1378_p1, %p1375_p0 }
   0x9   :  { %1383 = shalt.err (!%p1380_p2)
}
   0xa   :  { %s1384_s18 = scalar_lea.vmem %s17_s10, 128  ;;  %s1388_s19 = scalar_lea.vmem %s17_s10, 2048 }
   0xb   :  { %p1385_p3 = scmp.ne.s32.totalorder %s17_s10, %s1384_s18  ;;  %p1389_p4 = scmp.lt.s32.totalorder %s17_s10, %s17_s10 }
   0xc   :  { %p1390_p5 = scmp.lt.s32.totalorder %s1388_s19, %s1384_s18 }
   0xe   :  { %p1391_p6 = por %p1390_p5, %p1389_p4 }
  0x10   :  { %p1392_p7 = pnand %p1391_p6, %p1385_p3 }
  0x12   :  { %1395 = shalt.err (!%p1392_p7)
}
  0x13   :  { %s1447_s20 = smov 128   ;;  %s1448_s21 = smov 8  }
  0x14   :  { %22 = dma.hbm_to_vmem [thread:$0]  %s2371_s0, 128, %s17_s10, [#allocation6], %s1447_s20, %s1447_s20, %s1448_s21  }
  0x15   :  { %1440 = dma.done.wait [#allocation6], 2048  }
  0x16   :  { %1441 = vsyncadd [#allocation6], 4294965248  ;;  %vm30_vm0 = vcmask 7168   ;;  %v1449_v0 = vmov -inf   ;;  %vm96_vm1 = vcmask 130048   ;;  %v1497_v1 = vld [vmem:[#allocation5 + $0x10] sm:$0xff] }
  0x17   :  { %33 = vst.msk [vmem:[#allocation2 + $0x10] sm:$0xff] %vm30_vm0, %v1449_v0  ;;  %31 = vst.msk [vmem:[#allocation2] sm:$0xff] %vm30_vm0, %v1449_v0  ;;  %v1499_v2 = vld [vmem:[#allocation5] sm:$0xff]  ;;  %v1501_v3 = vld [vmem:[#allocation5 + $0x18] sm:$0xff]  ;;  %v103_v4 = vsel %vm96_vm1, %v1497_v1, -inf  ;;  %v1450_v23 = vmov 0  }
  0x18   :  { %32 = vst.msk [vmem:[#allocation2 + $0x8] sm:$0xff] %vm30_vm0, %v1449_v0  ;;  %34 = vst.msk [vmem:[#allocation2 + $0x18] sm:$0xff] %vm30_vm0, %v1449_v0  ;;  %v97_v5 = vsel %vm96_vm1, %v1499_v2, -inf  ;;  %v1507_v6 = vld [vmem:[#allocation5 + $0x8] sm:$0xff]  ;;  %104 = vmax.xlane.f32.xlu1 %v103_v4  ;;  %v106_v7 = vsel %vm96_vm1, %v1501_v3, -inf  ;;  %v1515_v10 = vld [vmem:[#allocation5 + $0x20] sm:$0xff]  ;;  %1276 = vset.pattern.permute.xlu0 %v1450_v23 }
  0x19   :  { %35 = vst.msk [vmem:[#allocation2 + $0x20] sm:$0xff] %vm30_vm0, %v1449_v0  ;;  %36 = vst.msk [vmem:[#allocation2 + $0x28] sm:$0xff] %vm30_vm0, %v1449_v0  ;;  %98 = vmax.xlane.f32.xlu0 %v97_v5  ;;  %v100_v8 = vsel %vm96_vm1, %v1507_v6, -inf  ;;  %v1513_v9 = vld [vmem:[#allocation5 + $0x28] sm:$0xff]  ;;  %v109_v12 = vsel %vm96_vm1, %v1515_v10, -inf  ;;  %v1521_v13 = vld [vmem:[#allocation5 + $0x38] sm:$0xff]  ;;  %1277 = vset.pattern.permute.xlu1 %v1450_v23 }
  0x1a   :  { %37 = vst.msk [vmem:[#allocation2 + $0x30] sm:$0xff] %vm30_vm0, %v1449_v0  ;;  %38 = vst.msk [vmem:[#allocation2 + $0x38] sm:$0xff] %vm30_vm0, %v1449_v0  ;;  %v112_v11 = vsel %vm96_vm1, %v1513_v9, -inf  ;;  %v1523_v14 = vld [vmem:[#allocation5 + $0x30] sm:$0xff]  ;;  %v118_v15 = vsel %vm96_vm1, %v1521_v13, -inf  ;;  %v1529_v17 = vld [vmem:[#allocation5 + $0x48] sm:$0xff] }
  0x1b   :  { %39 = vst.msk [vmem:[#allocation2 + $0x40] sm:$0xff] %vm30_vm0, %v1449_v0  ;;  %40 = vst.msk [vmem:[#allocation2 + $0x48] sm:$0xff] %vm30_vm0, %v1449_v0  ;;  %v115_v16 = vsel %vm96_vm1, %v1523_v14, -inf  ;;  %v1531_v18 = vld [vmem:[#allocation5 + $0x40] sm:$0xff]  ;;  %v124_v19 = vsel %vm96_vm1, %v1529_v17, -inf  ;;  %v1537_v21 = vld [vmem:[#allocation5 + $0x58] sm:$0xff] }
  0x1c   :  { %41 = vst.msk [vmem:[#allocation2 + $0x50] sm:$0xff] %vm30_vm0, %v1449_v0  ;;  %42 = vst.msk [vmem:[#allocation2 + $0x58] sm:$0xff] %vm30_vm0, %v1449_v0  ;;  %107 = vmax.xlane.f32.xlu1 %v106_v7  ;;  %v121_v20 = vsel %vm96_vm1, %v1531_v18, -inf  ;;  %v1539_v22 = vld [vmem:[#allocation5 + $0x50] sm:$0xff]  ;;  %v130_v24 = vsel %vm96_vm1, %v1537_v21, -inf  ;;  %v1561_v26 = vld [vmem:[#allocation5 + $0x68] sm:$0xff] }
  0x1d   :  { %43 = vst.msk [vmem:[#allocation2 + $0x60] sm:$0xff] %vm30_vm0, %v1449_v0  ;;  %44 = vst.msk [vmem:[#allocation2 + $0x68] sm:$0xff] %vm30_vm0, %v1449_v0  ;;  %101 = vmax.xlane.f32.xlu0 %v100_v8  ;;  %v127_v25 = vsel %vm96_vm1, %v1539_v22, -inf  ;;  %v1563_v27 = vld [vmem:[#allocation5 + $0x60] sm:$0xff]  ;;  %v136_v28 = vsel %vm96_vm1, %v1561_v26, -inf  ;;  %v1569_v30 = vld [vmem:[#allocation5 + $0x70] sm:$0xff] }
  0x1e   :  { %45 = vst.msk [vmem:[#allocation2 + $0x70] sm:$0xff] %vm30_vm0, %v1449_v0  ;;  %46 = vst.msk [vmem:[#allocation2 + $0x78] sm:$0xff] %vm30_vm0, %v1449_v0  ;;  %v133_v29 = vsel %vm96_vm1, %v1563_v27, -inf  ;;  %v1571_v31 = vld [vmem:[#allocation5 + $0x78] sm:$0xff]  ;;  %v139_v32 = vsel %vm96_vm1, %v1569_v30, -inf  ;;  %v1451_v34 = vmov 0.0  }
  0x1f   :  { %63 = vst.msk [vmem:[#allocation4] sm:$0xff] %vm30_vm0, %v1450_v23  ;;  %64 = vst.msk [vmem:[#allocation4 + $0x8] sm:$0xff] %vm30_vm0, %v1450_v23  ;;  %v142_v33 = vsel %vm96_vm1, %v1571_v31, -inf  ;;  %v1593_v35 = vld [vmem:[#allocation2 + $0x10] sm:$0xff]  ;;  %v1595_v36 = vld [vmem:[#allocation2] sm:$0xff]  ;;  %s1452_s0 = smov [#allocation8]  }
  0x20   :  { %113 = vmax.xlane.f32.xlu1 %v112_v11  ;;  %65 = vst.msk [vmem:[#allocation4 + $0x10] sm:$0xff] %vm30_vm0, %v1450_v23  ;;  %66 = vst.msk [vmem:[#allocation4 + $0x18] sm:$0xff] %vm30_vm0, %v1450_v23  ;;  %v1609_v41 = vld [vmem:[#allocation2 + $0x8] sm:$0xff]  ;;  %v1614_v42 = vld [vmem:[#allocation2 + $0x18] sm:$0xff]  ;;  %s1245_s24 = sshll.u32 %s1452_s0, 4  ;;  %s1453_s25 = smov [#allocation9]   ;;  %s1246_s24 = int_to_ptr.vmem [resolvable:$true] %s1245_s24 }
  0x21   :  { %110 = vmax.xlane.f32.xlu0 %v109_v12  ;;  %67 = vst.msk [vmem:[#allocation4 + $0x20] sm:$0xff] %vm30_vm0, %v1450_v23  ;;  %68 = vst.msk [vmem:[#allocation4 + $0x28] sm:$0xff] %vm30_vm0, %v1450_v23  ;;  %v1630_v47 = vld [vmem:[#allocation2 + $0x20] sm:$0xff]  ;;  %v1637_v49 = vld [vmem:[#allocation2 + $0x28] sm:$0xff]  ;;  %vm550_vm6 = vcmp.gt.f32.partialorder %v1609_v41, -inf  ;;  %s1255_s26 = sshll.u32 %s1453_s25, 4  ;;  %p1401_p9 = scmp.lt.s32.totalorder %s1246_s24, %s1246_s24  ;;  %s2339_s26 = int_to_ptr.vmem [resolvable:$true] %s1255_s26 }
  0x22   :  { %69 = vst.msk [vmem:[#allocation4 + $0x30] sm:$0xff] %vm30_vm0, %v1450_v23  ;;  %70 = vst.msk [vmem:[#allocation4 + $0x38] sm:$0xff] %vm30_vm0, %v1450_v23  ;;  %v1651_v54 = vld [vmem:[#allocation2 + $0x30] sm:$0xff]  ;;  %v1654_v55 = vld [vmem:[#allocation2 + $0x38] sm:$0xff]  ;;  %vm553_vm8 = vcmp.gt.f32.partialorder %v1630_v47, -inf  ;;  %s1396_s27 = scalar_lea.vmem %s1246_s24, 16 }
  0x23   :  { %71 = vst.msk [vmem:[#allocation4 + $0x40] sm:$0xff] %vm30_vm0, %v1450_v23  ;;  %72 = vst.msk [vmem:[#allocation4 + $0x48] sm:$0xff] %vm30_vm0, %v1450_v23  ;;  %v1666_v60 = vld [vmem:[#allocation2 + $0x48] sm:$0xff]  ;;  %v1675_v63 = vld [vmem:[#allocation2 + $0x40] sm:$0xff]  ;;  %vm555_vm9 = vcmp.gt.f32.partialorder %v1651_v54, -inf  ;;  %p1397_p8 = scmp.ne.s32.totalorder %s1246_s24, %s1396_s27  ;;  %s1400_s28 = scalar_lea.vmem %s1246_s24, 32 }
  0x24   :  { %119 = vmax.xlane.f32.xlu1 %v118_v15  ;;  %73 = vst.msk [vmem:[#allocation4 + $0x50] sm:$0xff] %vm30_vm0, %v1450_v23  ;;  %74 = vst.msk [vmem:[#allocation4 + $0x58] sm:$0xff] %vm30_vm0, %v1450_v23  ;;  %v1687_v7 = vld [vmem:[#allocation2 + $0x58] sm:$0xff]  ;;  %v1696_v11 = vld [vmem:[#allocation2 + $0x50] sm:$0xff]  ;;  %vm557_vm11 = vcmp.gt.f32.partialorder %v1675_v63, -inf  ;;  %p1402_p10 = scmp.lt.s32.totalorder %s1400_s28, %s1396_s27 }
  0x25   :  { %116 = vmax.xlane.f32.xlu0 %v115_v16  ;;  %75 = vst.msk [vmem:[#allocation4 + $0x60] sm:$0xff] %vm30_vm0, %v1450_v23  ;;  %76 = vst.msk [vmem:[#allocation4 + $0x68] sm:$0xff] %vm30_vm0, %v1450_v23  ;;  %vm559_vm12 = vcmp.gt.f32.partialorder %v1696_v11, -inf }
  0x26   :  { %77 = vst.msk [vmem:[#allocation4 + $0x70] sm:$0xff] %vm30_vm0, %v1450_v23  ;;  %78 = vst.msk [vmem:[#allocation4 + $0x78] sm:$0xff] %vm30_vm0, %v1450_v23  ;;  %p1403_p11 = por %p1402_p10, %p1401_p9 }
  0x27   :  { %2425 = vst [vmem:[#allocation14_spill] sm:$0xff] %v1571_v31  ;;  %47 = vst.msk [vmem:[#allocation3] sm:$0xff] %vm30_vm0, %v1451_v34 }
  0x28   :  { %125 = vmax.xlane.f32.xlu1 %v124_v19  ;;  %48 = vst.msk [vmem:[#allocation3 + $0x8] sm:$0xff] %vm30_vm0, %v1451_v34  ;;  %49 = vst.msk [vmem:[#allocation3 + $0x10] sm:$0xff] %vm30_vm0, %v1451_v34  ;;  %p1404_p12 = pnand %p1403_p11, %p1397_p8 }
  0x29   :  { %122 = vmax.xlane.f32.xlu0 %v121_v20  ;;  %50 = vst.msk [vmem:[#allocation3 + $0x18] sm:$0xff] %vm30_vm0, %v1451_v34  ;;  %51 = vst.msk [vmem:[#allocation3 + $0x20] sm:$0xff] %vm30_vm0, %v1451_v34  ;;  %v1708_v20 = vld [vmem:[#allocation2 + $0x68] sm:$0xff] }
  0x2a   :  { %52 = vst.msk [vmem:[#allocation3 + $0x28] sm:$0xff] %vm30_vm0, %v1451_v34  ;;  %53 = vst.msk [vmem:[#allocation3 + $0x30] sm:$0xff] %vm30_vm0, %v1451_v34 }
  0x2b   :  { %54 = vst.msk [vmem:[#allocation3 + $0x38] sm:$0xff] %vm30_vm0, %v1451_v34  ;;  %55 = vst.msk [vmem:[#allocation3 + $0x40] sm:$0xff] %vm30_vm0, %v1451_v34 }
  0x2c   :  { %131 = vmax.xlane.f32.xlu1 %v130_v24  ;;  %56 = vst.msk [vmem:[#allocation3 + $0x48] sm:$0xff] %vm30_vm0, %v1451_v34  ;;  %57 = vst.msk [vmem:[#allocation3 + $0x50] sm:$0xff] %vm30_vm0, %v1451_v34  ;;  %v1718_v24 = vld [vmem:[#allocation2 + $0x60] sm:$0xff] }
  0x2d   :  { %128 = vmax.xlane.f32.xlu0 %v127_v25  ;;  %58 = vst.msk [vmem:[#allocation3 + $0x58] sm:$0xff] %vm30_vm0, %v1451_v34  ;;  %59 = vst.msk [vmem:[#allocation3 + $0x60] sm:$0xff] %vm30_vm0, %v1451_v34  ;;  %vm561_vm13 = vcmp.gt.f32.partialorder %v1718_v24, -inf }
  0x2e   :  { %60 = vst.msk [vmem:[#allocation3 + $0x68] sm:$0xff] %vm30_vm0, %v1451_v34  ;;  %61 = vst.msk [vmem:[#allocation3 + $0x70] sm:$0xff] %vm30_vm0, %v1451_v34 }
  0x2f   :  { %62 = vst.msk [vmem:[#allocation3 + $0x78] sm:$0xff] %vm30_vm0, %v1451_v34  ;;  %2426 = vst [vmem:[#allocation15_spill] sm:$0xff] %v1593_v35  ;;  %v1734_v34 = vld [vmem:[#allocation2 + $0x70] sm:$0xff] }
  0x30   :  { %137 = vmax.xlane.f32.xlu1 %v136_v28  ;;  %2430 = vst [vmem:[#allocation19_spill] sm:$0xff] %v1609_v41  ;;  %2431 = vst [vmem:[#allocation20_spill] sm:$0xff] %v1614_v42  ;;  %vm563_vm15 = vcmp.gt.f32.partialorder %v1734_v34, -inf }
  0x31   :  { %134 = vmax.xlane.f32.xlu0 %v133_v29  ;;  %2435 = vst [vmem:[#allocation24_spill] sm:$0xff] %v1630_v47  ;;  %2436 = vst [vmem:[#allocation25_spill] sm:$0xff] %v1637_v49 }
  0x32   :  { %2440 = vst [vmem:[#allocation29_spill] sm:$0xff] %v1651_v54  ;;  %2441 = vst [vmem:[#allocation30_spill] sm:$0xff] %v1654_v55 }
  0x33   :  { %2444 = vst [vmem:[#allocation33_spill] sm:$0xff] %v1666_v60  ;;  %2446 = vst [vmem:[#allocation35_spill] sm:$0xff] %v1675_v63 }
  0x34   :  { %143 = vmax.xlane.f32.xlu1 %v142_v33  ;;  %2450 = vst [vmem:[#allocation39_spill] sm:$0xff] %v1687_v7  ;;  %2451 = vst [vmem:[#allocation40_spill] sm:$0xff] %v1696_v11 }
  0x35   :  { %140 = vmax.xlane.f32.xlu0 %v139_v32  ;;  %2455 = vst [vmem:[#allocation44_spill] sm:$0xff] %v1708_v20  ;;  %2456 = vst [vmem:[#allocation45_spill] sm:$0xff] %v1718_v24 }
  0x36   :  { %2460 = vst [vmem:[#allocation49_spill] sm:$0xff] %v1734_v34 }
  0xa5   :  { %v1597_v37 = vpop.xlane.xlu1 %104 }
  0xa6   :  { %2427 = vst [vmem:[#allocation16_spill] sm:$0xff] %v1597_v37  ;;  %v1599_v38 = vpop.xlane.xlu0 %98  ;;  %v1607_v40 = vmax.f32 %v1593_v35, %v1597_v37  ;;  %v1750_v35 = vld [vmem:[#allocation2 + $0x78] sm:$0xff]  ;;  %vm149_vm10 = vcmp.eq.f32.partialorder %v1497_v1, %v1597_v37 }
  0xa7   :  { %2428 = vst [vmem:[#allocation17_spill] sm:$0xff] %v1599_v38  ;;  %v1603_v39 = vmax.f32 %v1595_v36, %v1599_v38  ;;  %2463 = vst [vmem:[#allocation52_spill] sm:$0xff] %v1750_v35  ;;  %vm147_vm5 = vcmp.eq.f32.partialorder %v1499_v2, %v1599_v38 }
  0xa8   :  { %2429 = vst [vmem:[#allocation18_spill] sm:$0xff] %v1607_v40  ;;  %535 = vst.msk [vmem:[#allocation2 + $0x10] sm:$0xff] %vm30_vm0, %v1607_v40 }
  0xa9   :  { %631 = vperm.xlu0 %1276, %v1603_v39   ;;  %533 = vst.msk [vmem:[#allocation2] sm:$0xff] %vm30_vm0, %v1603_v39  ;;  %v1618_v43 = vpop.xlane.xlu1 %107 }
  0xaa   :  { %2432 = vst [vmem:[#allocation21_spill] sm:$0xff] %v1618_v43  ;;  %v1620_v44 = vpop.xlane.xlu0 %101  ;;  %v1628_v46 = vmax.f32 %v1614_v42, %v1618_v43  ;;  %vm150_vm14 = vcmp.eq.f32.partialorder %v1501_v3, %v1618_v43 }
  0xab   :  { %2433 = vst [vmem:[#allocation22_spill] sm:$0xff] %v1620_v44  ;;  %v1624_v45 = vmax.f32 %v1609_v41, %v1620_v44  ;;  %vm148_vm7 = vcmp.eq.f32.partialorder %v1507_v6, %v1620_v44 }
  0xac   :  { %2434 = vst [vmem:[#allocation23_spill] sm:$0xff] %v1628_v46  ;;  %536 = vst.msk [vmem:[#allocation2 + $0x18] sm:$0xff] %vm30_vm0, %v1628_v46 }
  0xad   :  { %636 = vperm.xlu1 %1277, %v1624_v45   ;;  %534 = vst.msk [vmem:[#allocation2 + $0x8] sm:$0xff] %vm30_vm0, %v1624_v45  ;;  %v566_v48 = vsub.f32 %v1609_v41, %v1624_v45  ;;  %v1639_v50 = vpop.xlane.xlu1 %113 }
  0xae   :  { %2437 = vst [vmem:[#allocation26_spill] sm:$0xff] %v1639_v50  ;;  %v1643_v51 = vpop.xlane.xlu0 %110  ;;  %v1649_v53 = vmax.f32 %v1637_v49, %v1639_v50 }
  0xaf   :  { %2438 = vst [vmem:[#allocation27_spill] sm:$0xff] %v1643_v51  ;;  %v521_v52 = vmax.f32 %v1630_v47, %v1643_v51 }
  0xb0   :  { %2439 = vst [vmem:[#allocation28_spill] sm:$0xff] %v1649_v53  ;;  %538 = vst.msk [vmem:[#allocation2 + $0x28] sm:$0xff] %vm30_vm0, %v1649_v53 }
  0xb1   :  { %641 = vperm.xlu1 %1277, %v1607_v40   ;;  %537 = vst.msk [vmem:[#allocation2 + $0x20] sm:$0xff] %vm30_vm0, %v521_v52  ;;  %v569_v56 = vsub.f32 %v1630_v47, %v521_v52  ;;  %v1658_v57 = vpop.xlane.xlu1 %119  ;;  %v2391_v40 = vlaneseq }
  0xb2   :  { %2442 = vst [vmem:[#allocation31_spill] sm:$0xff] %v1658_v57  ;;  %v1662_v58 = vpop.xlane.xlu0 %116  ;;  %v1670_v61 = vmax.f32 %v1654_v55, %v1658_v57 }
  0xb3   :  { %2443 = vst [vmem:[#allocation32_spill] sm:$0xff] %v1662_v58  ;;  %v523_v59 = vmax.f32 %v1651_v54, %v1662_v58 }
  0xb4   :  { %2445 = vst [vmem:[#allocation34_spill] sm:$0xff] %v1670_v61  ;;  %540 = vst.msk [vmem:[#allocation2 + $0x38] sm:$0xff] %vm30_vm0, %v1670_v61 }
  0xb5   :  { %646 = vperm.xlu1 %1277, %v1628_v46   ;;  %539 = vst.msk [vmem:[#allocation2 + $0x30] sm:$0xff] %vm30_vm0, %v523_v59  ;;  %v571_v62 = vsub.f32 %v1651_v54, %v523_v59  ;;  %v1677_v0 = vpop.xlane.xlu1 %125 }
  0xb6   :  { %2447 = vst [vmem:[#allocation36_spill] sm:$0xff] %v1677_v0  ;;  %v1681_v4 = vpop.xlane.xlu0 %122  ;;  %v1685_v5 = vmax.f32 %v1666_v60, %v1677_v0 }
  0xb7   :  { %2448 = vst [vmem:[#allocation37_spill] sm:$0xff] %v1681_v4  ;;  %vm460_vm2 = vcmp.gt.f32.partialorder %v1681_v4, %v1675_v63  ;;  %v525_v8 = vmax.f32 %v1675_v63, %v1681_v4  ;;  %v593_v60 = vmul.f32 1.442695, %v571_v62 }
  0xb8   :  { %2449 = vst [vmem:[#allocation38_spill] sm:$0xff] %v1685_v5  ;;  %542 = vst.msk [vmem:[#allocation2 + $0x48] sm:$0xff] %vm30_vm0, %v1685_v5  ;;  %676 = vperm.xlu0 %1276, %v1685_v5  }
  0xb9   :  { %651 = vperm.xlu1 %1277, %v521_v52   ;;  %v1698_v12 = vpop.xlane.xlu1 %131  ;;  %541 = vst.msk [vmem:[#allocation2 + $0x40] sm:$0xff] %vm30_vm0, %v525_v8  ;;  %v573_v15 = vsub.f32 %v1675_v63, %v525_v8 }
  0xba   :  { %2452 = vst [vmem:[#allocation41_spill] sm:$0xff] %v1698_v12  ;;  %v1702_v16 = vpop.xlane.xlu0 %128  ;;  %v1706_v19 = vmax.f32 %v1687_v7, %v1698_v12 }
  0xbb   :  { %2453 = vst [vmem:[#allocation42_spill] sm:$0xff] %v1702_v16  ;;  %vm462_vm3 = vcmp.gt.f32.partialorder %v1702_v16, %v1696_v11  ;;  %v527_v23 = vmax.f32 %v1696_v11, %v1702_v16 }
  0xbc   :  { %2454 = vst [vmem:[#allocation43_spill] sm:$0xff] %v1706_v19  ;;  %544 = vst.msk [vmem:[#allocation2 + $0x58] sm:$0xff] %vm30_vm0, %v1706_v19  ;;  %686 = vperm.xlu0 %1276, %v1706_v19   ;;  %v589_v19 = vmul.f32 1.442695, %v569_v56 }
  0xbd   :  { %656 = vperm.xlu1 %1277, %v1649_v53   ;;  %v1720_v25 = vpop.xlane.xlu1 %137  ;;  %543 = vst.msk [vmem:[#allocation2 + $0x50] sm:$0xff] %vm30_vm0, %v527_v23  ;;  %v575_v28 = vsub.f32 %v1696_v11, %v527_v23 }
  0xbe   :  { %2457 = vst [vmem:[#allocation46_spill] sm:$0xff] %v1720_v25  ;;  %v1724_v29 = vpop.xlane.xlu0 %134  ;;  %v1728_v32 = vmax.f32 %v1708_v20, %v1720_v25  ;;  %v583_v20 = vmul.f32 1.442695, %v566_v48 }
  0xbf   :  { %2458 = vst [vmem:[#allocation47_spill] sm:$0xff] %v1724_v29  ;;  %vm464_vm4 = vcmp.gt.f32.partialorder %v1724_v29, %v1718_v24  ;;  %v529_v33 = vmax.f32 %v1718_v24, %v1724_v29  ;;  %v601_v5 = vmul.f32 1.442695, %v575_v28 }
  0xc0   :  { %2459 = vst [vmem:[#allocation48_spill] sm:$0xff] %v1728_v32  ;;  %546 = vst.msk [vmem:[#allocation2 + $0x68] sm:$0xff] %vm30_vm0, %v1728_v32  ;;  %696 = vperm.xlu0 %1276, %v1728_v32   ;;  %1278 = vpow2.f32 %v583_v20  ;;  %v597_v32 = vmul.f32 1.442695, %v573_v15 }
  0xc1   :  { %661 = vperm.xlu1 %1277, %v523_v59   ;;  %545 = vst.msk [vmem:[#allocation2 + $0x60] sm:$0xff] %vm30_vm0, %v529_v33  ;;  %v577_v45 = vsub.f32 %v1718_v24, %v529_v33  ;;  %1280 = vpow2.f32 %v589_v19  ;;  %v1748_v55 = vpop.xlane.xlu1 %143 }
  0xc2   :  { %v1741_v52 = vpop.xlane.xlu0 %140  ;;  %2462 = vst [vmem:[#allocation51_spill] sm:$0xff] %v1748_v55  ;;  %1282 = vpow2.f32 %v593_v60  ;;  %v1754_v49 = vmax.f32 %v1750_v35, %v1748_v55  ;;  %v1762_v60 = vand.u32 127, %v2391_v40 }
  0xc3   :  { %2461 = vst [vmem:[#allocation50_spill] sm:$0xff] %v1741_v52  ;;  %v531_v7 = vmax.f32 %v1734_v34, %v1741_v52  ;;  %v605_v48 = vmul.f32 1.442695, %v577_v45  ;;  %1284 = vpow2.f32 %v597_v32 }
  0xc4   :  { %2464 = vst [vmem:[#allocation53_spill] sm:$0xff] %v1754_v49  ;;  %1286 = vpow2.f32 %v601_v5  ;;  %548 = vst.msk [vmem:[#allocation2 + $0x78] sm:$0xff] %vm30_vm0, %v1754_v49  ;;  %v163_v5 = vsel %vm147_vm5, %v1762_v60, 16  ;;  %v164_v19 = vsel %vm148_vm7, %v1762_v60, 16  ;;  %vm151_vm5 = vcmp.eq.f32.partialorder %v1515_v10, %v1643_v51 }
  0xc5   :  { %666 = vperm.xlu1 %1277, %v1670_v61   ;;  %547 = vst.msk [vmem:[#allocation2 + $0x70] sm:$0xff] %vm30_vm0, %v531_v7  ;;  %v579_v59 = vsub.f32 %v1734_v34, %v531_v7  ;;  %1288 = vpow2.f32 %v605_v48  ;;  %2465 = vst [vmem:[#allocation54_spill] sm:$0xff] %v1762_v60  ;;  %v1778_v32 = vsel %vm96_vm1, %v164_v19, 2147483647  ;;  %v166_v24 = vsel %vm150_vm14, %v1762_v60, 16 }
  0xc6   :  { %v1815_v34 = vsel %vm96_vm1, %v166_v24, 2147483647  ;;  %vm153_vm7 = vcmp.eq.f32.partialorder %v1523_v14, %v1662_v58  ;;  %vm160_vm14 = vcmp.eq.f32.partialorder %v1561_v26, %v1720_v25 }
  0xc7   :  { %v609_v61 = vmul.f32 1.442695, %v579_v59 }
  0xc9   :  { %671 = vperm.xlu1 %1277, %v525_v8   ;;  %1290 = vpow2.f32 %v609_v61  ;;  %v1773_v61 = vsel %vm96_vm1, %v163_v5, 2147483647 }
  0xca   :  { %v1279_v56 = vpop.eup %1278  ;;  %v181_v45 = vshra.s32 %v1773_v61, 16 }
  0xcb   :  { %v1281_v62 = vpop.eup %1280  ;;  %v1767_v8 = vsel %vm550_vm6, %v1279_v56, 0.0  ;;  %v196_v56 = vshra.s32 %v1778_v32, 16  ;;  %vm152_vm6 = vcmp.eq.f32.partialorder %v1513_v9, %v1639_v50 }
  0xcc   :  { %2466 = vst [vmem:[#allocation55_spill] sm:$0xff] %v1767_v8  ;;  %v1283_v15 = vpop.eup %1282  ;;  %v1775_v20 = vsel %vm553_vm8, %v1281_v62, 0.0  ;;  %v165_v62 = vsel %vm149_vm10, %v1762_v60, 16  ;;  %v1798_v19 = vcvt.s32.f32 %v181_v45  ;;  %v167_v45 = vsel %vm151_vm5, %v1762_v60, 16 }
  0xcd   :  { %681 = vperm.xlu1 %1277, %v527_v23   ;;  %2467 = vst [vmem:[#allocation56_spill] sm:$0xff] %v1775_v20  ;;  %v1285_v23 = vpop.eup %1284  ;;  %v168_v11 = vsel %vm152_vm6, %v1762_v60, 16  ;;  %vm154_vm8 = vcmp.eq.f32.partialorder %v1521_v13, %v1658_v57  ;;  %vm156_vm10 = vcmp.eq.f32.partialorder %v1529_v17, %v1677_v0  ;;  %vm162_vm5 = vcmp.eq.f32.partialorder %v1571_v31, %v1748_v55 }
  0xce   :  { %v1287_v28 = vpop.eup %1286  ;;  %v1786_v59 = vsel %vm557_vm11, %v1285_v23, 0.0  ;;  %v1802_v23 = vsel %vm96_vm1, %v165_v62, 2147483647  ;;  %v1819_v62 = vsel %vm96_vm1, %v167_v45, 2147483647  ;;  %v169_v45 = vsel %vm153_vm7, %v1762_v60, 16 }
  0xcf   :  { %2469 = vst [vmem:[#allocation58_spill] sm:$0xff] %v1786_v59  ;;  %v1791_v5 = vsel %vm559_vm12, %v1287_v28, 0.0  ;;  %v1809_v28 = vcvt.s32.f32 %v196_v56  ;;  %v226_v56 = vshra.s32 %v1815_v34, 16  ;;  %v241_v24 = vshra.s32 %v1819_v62, 16 }
  0xd0   :  { %2470 = vst [vmem:[#allocation59_spill] sm:$0xff] %v1791_v5  ;;  %v1835_v54 = vsel %vm96_vm1, %v168_v11, 2147483647  ;;  %v1841_v50 = vsel %vm96_vm1, %v169_v45, 2147483647  ;;  %vm157_vm11 = vcmp.eq.f32.partialorder %v1539_v22, %v1702_v16  ;;  %vm158_vm12 = vcmp.eq.f32.partialorder %v1537_v21, %v1698_v12 }
  0xd1   :  { %691 = vperm.xlu1 %1277, %v529_v33   ;;  %v1782_v33 = vsel %vm555_vm9, %v1283_v15, 0.0  ;;  %v1831_v63 = vcvt.s32.f32 %v226_v56  ;;  %v256_v58 = vshra.s32 %v1835_v54, 16  ;;  %vm155_vm9 = vcmp.eq.f32.partialorder %v1531_v18, %v1681_v4 }
  0xd2   :  { %2468 = vst [vmem:[#allocation57_spill] sm:$0xff] %v1782_v33  ;;  %v271_v11 = vshra.s32 %v1841_v50, 16  ;;  %v170_v56 = vsel %vm154_vm8, %v1762_v60, 16 }
  0xd3   :  { %v1851_v51 = vcvt.s32.f32 %v256_v58  ;;  %v1855_v45 = vsel %vm96_vm1, %v170_v56, 2147483647  ;;  %v172_v56 = vsel %vm156_vm10, %v1762_v60, 16 }
  0xd4   :  { %v1858_v57 = vcvt.s32.f32 %v271_v11  ;;  %v286_v4 = vshra.s32 %v1855_v45, 16  ;;  %v173_v11 = vsel %vm157_vm11, %v1762_v60, 16 }
  0xd5   :  { %701 = vperm.xlu1 %1277, %v531_v7   ;;  %v1289_v7 = vpop.eup %1288  ;;  %v1881_v37 = vsel %vm96_vm1, %v173_v11, 2147483647 }
  0xd6   :  { %v1291_v48 = vpop.eup %1290  ;;  %v1796_v15 = vsel %vm561_vm13, %v1289_v7, 0.0  ;;  %v211_v7 = vshra.s32 %v1802_v23, 16  ;;  %v1871_v43 = vcvt.s32.f32 %v286_v4  ;;  %vm159_vm13 = vcmp.eq.f32.partialorder %v1563_v27, %v1724_v29 }
  0xd7   :  { %2471 = vst [vmem:[#allocation60_spill] sm:$0xff] %v1796_v15  ;;  %v1806_v40 = vsel %vm563_vm15, %v1291_v48, 0.0  ;;  %v331_v4 = vshra.s32 %v1881_v37, 16  ;;  %vm161_vm15 = vcmp.eq.f32.partialorder %v1569_v30, %v1741_v52 }
  0xd8   :  { %2472 = vst [vmem:[#allocation61_spill] sm:$0xff] %v1806_v40  ;;  %v1823_v48 = vcvt.s32.f32 %v211_v7  ;;  %v1838_v7 = vcvt.s32.f32 %v241_v24  ;;  %v171_v24 = vsel %vm155_vm9, %v1762_v60, 16 }
  0xd9   :  { %v1861_v47 = vsel %vm96_vm1, %v171_v24, 2147483647  ;;  %v1875_v24 = vsel %vm96_vm1, %v172_v56, 2147483647  ;;  %v174_v56 = vsel %vm158_vm12, %v1762_v60, 16  ;;  %v1898_v12 = vcvt.s32.f32 %v331_v4 }
  0xda   :  { %v301_v58 = vshra.s32 %v1861_v47, 16  ;;  %v316_v16 = vshra.s32 %v1875_v24, 16  ;;  %v1895_v11 = vsel %vm96_vm1, %v174_v56, 2147483647  ;;  %v176_v56 = vsel %vm160_vm14, %v1762_v60, 16 }
  0xdb   :  { %v346_v29 = vshra.s32 %v1895_v11, 16  ;;  %v177_v4 = vsel %vm161_vm15, %v1762_v60, 16 }
  0xdc   :  { %v1878_v0 = vcvt.s32.f32 %v301_v58  ;;  %v1891_v44 = vcvt.s32.f32 %v316_v16  ;;  %v175_v58 = vsel %vm159_vm13, %v1762_v60, 16  ;;  %v1923_v52 = vsel %vm96_vm1, %v177_v4, 2147483647 }
  0xdd   :  { %v1901_v41 = vsel %vm96_vm1, %v175_v58, 2147483647  ;;  %v1911_v38 = vcvt.s32.f32 %v346_v29  ;;  %v1915_v58 = vsel %vm96_vm1, %v176_v56, 2147483647  ;;  %v178_v29 = vsel %vm162_vm5, %v1762_v60, 16 }
  0xde   :  { %v361_v16 = vshra.s32 %v1901_v41, 16  ;;  %v376_v35 = vshra.s32 %v1915_v58, 16  ;;  %v391_v40 = vshra.s32 %v1923_v52, 16  ;;  %v1930_v56 = vsel %vm96_vm1, %v178_v29, 2147483647 }
  0xdf   :  { %184 = vmin.xlane.f32.xlu0 %v1798_v19  ;;  %v406_v4 = vshra.s32 %v1930_v56, 16 }
  0xe0   :  { %v1920_v25 = vcvt.s32.f32 %v361_v16  ;;  %v1932_v15 = vcvt.s32.f32 %v376_v35  ;;  %v1935_v16 = vcvt.s32.f32 %v391_v40 }
  0xe1   :  { %v1939_v55 = vcvt.s32.f32 %v406_v4 }
  0xe3   :  { %199 = vmin.xlane.f32.xlu0 %v1809_v28 }
  0xe7   :  { %214 = vmin.xlane.f32.xlu0 %v1823_v48 }
  0xeb   :  { %229 = vmin.xlane.f32.xlu0 %v1831_v63 }
  0xef   :  { %244 = vmin.xlane.f32.xlu0 %v1838_v7 }
  0xf3   :  { %259 = vmin.xlane.f32.xlu0 %v1851_v51 }
  0xf7   :  { %274 = vmin.xlane.f32.xlu0 %v1858_v57 }
  0xfb   :  { %289 = vmin.xlane.f32.xlu0 %v1871_v43 }
  0xff   :  { %304 = vmin.xlane.f32.xlu0 %v1878_v0 }
 0x103   :  { %319 = vmin.xlane.f32.xlu0 %v1891_v44 }
 0x107   :  { %334 = vmin.xlane.f32.xlu0 %v1898_v12 }
 0x10b   :  { %349 = vmin.xlane.f32.xlu0 %v1911_v38 }
 0x10f   :  { %364 = vmin.xlane.f32.xlu0 %v1920_v25 }
 0x113   :  { %379 = vmin.xlane.f32.xlu0 %v1932_v15 }
 0x117   :  { %394 = vmin.xlane.f32.xlu0 %v1935_v16 }
 0x11b   :  { %409 = vmin.xlane.f32.xlu0 %v1939_v55 }
 0x128   :  { %v632_v60 = vpop.permute.xlu0 %631 }
 0x129   :  { %v709_v5 = vsub.f32 %v1499_v2, %v632_v60 }
 0x12b   :  { %v725_v59 = vmul.f32 1.442695, %v709_v5 }
 0x12c   :  { %v637_v29 = vpop.permute.xlu1 %636 }
 0x12d   :  { %1292 = vpow2.f32 %v725_v59  ;;  %v710_v53 = vsub.f32 %v1507_v6, %v637_v29 }
 0x12f   :  { %v727_v46 = vmul.f32 1.442695, %v710_v53 }
 0x130   :  { %v642_v35 = vpop.permute.xlu1 %641 }
 0x131   :  { %706 = vperm.xlu0 %1276, %v1754_v49   ;;  %v711_v5 = vsub.f32 %v1497_v1, %v642_v35 }
 0x133   :  { %v729_v29 = vmul.f32 1.442695, %v711_v5 }
 0x134   :  { %v647_v33 = vpop.permute.xlu1 %646 }
 0x135   :  { %v712_v40 = vsub.f32 %v1501_v3, %v647_v33 }
 0x137   :  { %v1293_v20 = vpop.eup %1292  ;;  %v731_v8 = vmul.f32 1.442695, %v712_v40  ;;  %v677_v2 = vpop.permute.xlu0 %676 }
 0x138   :  { %v652_v4 = vpop.permute.xlu1 %651  ;;  %v789_v42 = vsel %vm96_vm1, %v1293_v20, 0.0  ;;  %v718_v20 = vsub.f32 %v1529_v17, %v677_v2 }
 0x139   :  { %1294 = vpow2.f32 %v731_v8  ;;  %790 = vadd.xlane.f32.xlu1 %v789_v42  ;;  %v713_v3 = vsub.f32 %v1515_v10, %v652_v4 }
 0x13a   :  { %1296 = vpow2.f32 %v727_v46  ;;  %v743_v1 = vmul.f32 1.442695, %v718_v20 }
 0x13b   :  { %v687_v40 = vpop.permute.xlu0 %686  ;;  %v733_v8 = vmul.f32 1.442695, %v713_v3 }
 0x13c   :  { %v657_v60 = vpop.permute.xlu1 %656  ;;  %v720_v10 = vsub.f32 %v1537_v21, %v687_v40 }
 0x13d   :  { %v714_v59 = vsub.f32 %v1513_v9, %v657_v60 }
 0x13f   :  { %v735_v49 = vmul.f32 1.442695, %v714_v59  ;;  %v747_v59 = vmul.f32 1.442695, %v720_v10 }
 0x140   :  { %v662_v33 = vpop.permute.xlu1 %661 }
 0x141   :  { %1298 = vpow2.f32 %v735_v49  ;;  %v715_v31 = vsub.f32 %v1523_v14, %v662_v33  ;;  %v697_v49 = vpop.permute.xlu0 %696 }
 0x142   :  { %1300 = vpow2.f32 %v729_v29  ;;  %v722_v14 = vsub.f32 %v1561_v26, %v697_v49 }
 0x143   :  { %v1295_v6 = vpop.eup %1294  ;;  %1302 = vpow2.f32 %v733_v8  ;;  %v737_v4 = vmul.f32 1.442695, %v715_v31 }
 0x144   :  { %v667_v42 = vpop.permute.xlu1 %666  ;;  %v798_v53 = vsel %vm96_vm1, %v1295_v6, 0.0  ;;  %v1297_v2 = vpop.eup %1296  ;;  %v751_v31 = vmul.f32 1.442695, %v722_v14 }
 0x145   :  { %v716_v9 = vsub.f32 %v1521_v13, %v667_v42  ;;  %799 = vadd.xlane.f32.xlu1 %v798_v53  ;;  %v792_v33 = vsel %vm96_vm1, %v1297_v2, 0.0 }
 0x147   :  { %v739_v46 = vmul.f32 1.442695, %v716_v9 }
 0x148   :  { %v672_v35 = vpop.permute.xlu1 %671 }
 0x149   :  { %1304 = vpow2.f32 %v739_v46  ;;  %v717_v17 = vsub.f32 %v1531_v18, %v672_v35 }
 0x14a   :  { %1306 = vpow2.f32 %v743_v1 }
 0x14b   :  { %v1299_v60 = vpop.eup %1298  ;;  %1308 = vpow2.f32 %v737_v4  ;;  %v741_v21 = vmul.f32 1.442695, %v717_v17 }
 0x14c   :  { %v804_v13 = vsel %vm96_vm1, %v1299_v60, 0.0  ;;  %v682_v5 = vpop.permute.xlu1 %681  ;;  %1310 = vpow2.f32 %v747_v59  ;;  %v1301_v18 = vpop.eup %1300 }
 0x14d   :  { %805 = vadd.xlane.f32.xlu1 %v804_v13  ;;  %v719_v3 = vsub.f32 %v1539_v22, %v682_v5  ;;  %1312 = vpow2.f32 %v741_v21  ;;  %v1303_v26 = vpop.eup %1302  ;;  %v795_v8 = vsel %vm96_vm1, %v1301_v18, 0.0 }
 0x14e   :  { %1314 = vpow2.f32 %v751_v31  ;;  %v801_v10 = vsel %vm96_vm1, %v1303_v26, 0.0 }
 0x14f   :  { %v745_v6 = vmul.f32 1.442695, %v719_v3 }
 0x150   :  { %v692_v40 = vpop.permute.xlu1 %691  ;;  %793 = vadd.xlane.f32.xlu0 %v792_v33  ;;  %v180_v33 = vand.u32 65535, %v1773_v61 }
 0x151   :  { %v721_v29 = vsub.f32 %v1563_v27, %v692_v40  ;;  %1316 = vpow2.f32 %v745_v6  ;;  %v195_v6 = vand.u32 65535, %v1778_v32  ;;  %v225_v32 = vand.u32 65535, %v1815_v34 }
 0x152   :  { %v182_v18 = vcvt.s32.f32 %v180_v33  ;;  %v255_v34 = vand.u32 65535, %v1835_v54  ;;  %v285_v54 = vand.u32 65535, %v1855_v45  ;;  %v315_v45 = vand.u32 65535, %v1875_v24 }
 0x153   :  { %v1305_v20 = vpop.eup %1304  ;;  %v749_v9 = vmul.f32 1.442695, %v721_v29  ;;  %v345_v24 = vand.u32 65535, %v1895_v11  ;;  %v375_v11 = vand.u32 65535, %v1915_v58  ;;  %v405_v58 = vand.u32 65535, %v1930_v56 }
 0x154   :  { %v810_v42 = vsel %vm96_vm1, %v1305_v20, 0.0  ;;  %v702_v53 = vpop.permute.xlu1 %701  ;;  %v1307_v22 = vpop.eup %1306  ;;  %796 = vadd.xlane.f32.xlu0 %v795_v8  ;;  %v197_v20 = vcvt.s32.f32 %v195_v6  ;;  %v210_v8 = vand.u32 65535, %v1802_v23  ;;  %v240_v23 = vand.u32 65535, %v1819_v62 }
 0x155   :  { %811 = vadd.xlane.f32.xlu1 %v810_v42  ;;  %v723_v1 = vsub.f32 %v1569_v30, %v702_v53  ;;  %v1309_v46 = vpop.eup %1308  ;;  %v816_v27 = vsel %vm96_vm1, %v1307_v22, 0.0  ;;  %1318 = vpow2.f32 %v749_v9  ;;  %v227_v9 = vcvt.s32.f32 %v225_v32 }
 0x156   :  { %v1311_v49 = vpop.eup %1310  ;;  %v807_v4 = vsel %vm96_vm1, %v1309_v46, 0.0  ;;  %v212_v53 = vcvt.s32.f32 %v210_v8  ;;  %v270_v62 = vand.u32 65535, %v1841_v50  ;;  %v300_v50 = vand.u32 65535, %v1861_v47 }
 0x157   :  { %v753_v35 = vmul.f32 1.442695, %v723_v1  ;;  %v1313_v17 = vpop.eup %1312  ;;  %v822_v2 = vsel %vm96_vm1, %v1311_v49, 0.0  ;;  %v330_v47 = vand.u32 65535, %v1881_v37  ;;  %v360_v37 = vand.u32 65535, %v1901_v41 }
 0x158   :  { %802 = vadd.xlane.f32.xlu0 %v801_v10  ;;  %v1315_v60 = vpop.eup %1314  ;;  %v813_v30 = vsel %vm96_vm1, %v1313_v17, 0.0  ;;  %v242_v10 = vcvt.s32.f32 %v240_v23  ;;  %v287_v17 = vcvt.s32.f32 %v285_v54  ;;  %v390_v41 = vand.u32 65535, %v1923_v52  ;;  %v2473_v23 = vld [vmem:[#allocation14_spill] sm:$0xff]  ;;  %v2476_v54 = vld [vmem:[#allocation28_spill] sm:$0xff] }
 0x159   :  { %817 = vadd.xlane.f32.xlu1 %v816_v27  ;;  %1320 = vpow2.f32 %v753_v35  ;;  %v828_v14 = vsel %vm96_vm1, %v1315_v60, 0.0  ;;  %v257_v27 = vcvt.s32.f32 %v255_v34  ;;  %v272_v35 = vcvt.s32.f32 %v270_v62  ;;  %v2475_v34 = vld [vmem:[#allocation20_spill] sm:$0xff] }
 0x15a   :  { %v302_v60 = vcvt.s32.f32 %v300_v50  ;;  %v362_v33 = vcvt.s32.f32 %v360_v37  ;;  %v2479_v37 = vld [vmem:[#allocation15_spill] sm:$0xff] }
 0x15b   :  { %v1317_v59 = vpop.eup %1316 }
 0x15c   :  { %808 = vadd.xlane.f32.xlu0 %v807_v4  ;;  %v819_v13 = vsel %vm96_vm1, %v1317_v59, 0.0  ;;  %v317_v59 = vcvt.s32.f32 %v315_v45 }
 0x15d   :  { %823 = vadd.xlane.f32.xlu1 %v822_v2 }
 0x15f   :  { %v1319_v5 = vpop.eup %1318 }
 0x160   :  { %814 = vadd.xlane.f32.xlu0 %v813_v30  ;;  %v825_v21 = vsel %vm96_vm1, %v1319_v5, 0.0 }
 0x161   :  { %829 = vadd.xlane.f32.xlu1 %v828_v14 }
 0x163   :  { %v1321_v3 = vpop.eup %1320 }
 0x164   :  { %820 = vadd.xlane.f32.xlu0 %v819_v13  ;;  %v831_v31 = vsel %vm96_vm1, %v1321_v3, 0.0  ;;  %v332_v13 = vcvt.s32.f32 %v330_v47 }
 0x168   :  { %826 = vadd.xlane.f32.xlu0 %v825_v21  ;;  %v347_v21 = vcvt.s32.f32 %v345_v24 }
 0x16c   :  { %832 = vadd.xlane.f32.xlu0 %v831_v31  ;;  %v1974_v40 = vpop.xlane.xlu0 %184 }
 0x16d   :  { %vm186_vm6 = vcmp.eq.f32.partialorder %v1798_v19, %v1974_v40 }
 0x16e   :  { %v1979_v29 = vsel %vm186_vm6, %v182_v18, inf  ;;  %v377_v18 = vcvt.s32.f32 %v375_v11  ;;  %v2480_v11 = vld [vmem:[#allocation34_spill] sm:$0xff] }
 0x170   :  { %v1981_v26 = vpop.xlane.xlu0 %199 }
 0x171   :  { %vm201_vm7 = vcmp.eq.f32.partialorder %v1809_v28, %v1981_v26 }
 0x172   :  { %v1986_v61 = vsel %vm201_vm7, %v197_v20, inf  ;;  %v392_v20 = vcvt.s32.f32 %v390_v41 }
 0x174   :  { %v1988_v42 = vpop.xlane.xlu0 %214 }
 0x175   :  { %vm216_vm8 = vcmp.eq.f32.partialorder %v1823_v48, %v1988_v42 }
 0x176   :  { %v1993_v19 = vsel %vm216_vm8, %v212_v53, inf  ;;  %v407_v53 = vcvt.s32.f32 %v405_v58 }
 0x178   :  { %v1995_v22 = vpop.xlane.xlu0 %229 }
 0x179   :  { %vm231_vm9 = vcmp.eq.f32.partialorder %v1831_v63, %v1995_v22 }
 0x17a   :  { %v2000_v28 = vsel %vm231_vm9, %v227_v9, inf }
 0x17c   :  { %v2002_v1 = vpop.xlane.xlu0 %244 }
 0x17d   :  { %vm246_vm10 = vcmp.eq.f32.partialorder %v1838_v7, %v2002_v1 }
 0x17e   :  { %v2007_v48 = vsel %vm246_vm10, %v242_v10, inf }
 0x180   :  { %v2009_v46 = vpop.xlane.xlu0 %259 }
 0x181   :  { %vm261_vm11 = vcmp.eq.f32.partialorder %v1851_v51, %v2009_v46 }
 0x182   :  { %v2014_v63 = vsel %vm261_vm11, %v257_v27, inf  ;;  %vm549_vm11 = vcmp.gt.f32.partialorder %v1595_v36, -inf }
 0x184   :  { %v2016_v49 = vpop.xlane.xlu0 %274 }
 0x185   :  { %vm276_vm12 = vcmp.eq.f32.partialorder %v1858_v57, %v2016_v49 }
 0x186   :  { %v2021_v7 = vsel %vm276_vm12, %v272_v35, inf }
 0x188   :  { %v2023_v4 = vpop.xlane.xlu0 %289 }
 0x189   :  { %vm291_vm13 = vcmp.eq.f32.partialorder %v1871_v43, %v2023_v4 }
 0x18a   :  { %v2028_v51 = vsel %vm291_vm13, %v287_v17, inf  ;;  %v2477_v17 = vld [vmem:[#allocation25_spill] sm:$0xff] }
 0x18b   :  { %v570_v50 = vsub.f32 %v2477_v17, %v2476_v54  ;;  %vm554_vm12 = vcmp.gt.f32.partialorder %v2477_v17, -inf }
 0x18c   :  { %v2030_v2 = vpop.xlane.xlu0 %304 }
 0x18d   :  { %vm306_vm14 = vcmp.eq.f32.partialorder %v1878_v0, %v2030_v2 }
 0x18e   :  { %v2035_v57 = vsel %vm306_vm14, %v302_v60, inf  ;;  %v757_v60 = vld [vmem:[#allocation3] sm:$0xff]  ;;  %vm551_vm14 = vcmp.gt.f32.partialorder %v2479_v37, -inf }
 0x190   :  { %v2037_v30 = vpop.xlane.xlu0 %319 }
 0x191   :  { %vm321_vm15 = vcmp.eq.f32.partialorder %v1891_v44, %v2037_v30 }
 0x192   :  { %v2042_v43 = vsel %vm321_vm15, %v317_v59, inf  ;;  %v591_v59 = vmul.f32 1.442695, %v570_v50  ;;  %v2486_v50 = vld [vmem:[#allocation48_spill] sm:$0xff] }
 0x194   :  { %v2044_v14 = vpop.xlane.xlu0 %334 }
 0x195   :  { %vm336_vm5 = vcmp.eq.f32.partialorder %v1898_v12, %v2044_v14 }
 0x196   :  { %v2049_v0 = vsel %vm336_vm5, %v332_v13, inf }
 0x198   :  { %v2051_v5 = vpop.xlane.xlu0 %349 }
 0x199   :  { %vm351_vm6 = vcmp.eq.f32.partialorder %v1911_v38, %v2051_v5 }
 0x19a   :  { %v2056_v44 = vsel %vm351_vm6, %v347_v21, inf  ;;  %v2478_v21 = vld [vmem:[#allocation18_spill] sm:$0xff] }
 0x19c   :  { %v2058_v3 = vpop.xlane.xlu0 %364 }
 0x19d   :  { %vm366_vm7 = vcmp.eq.f32.partialorder %v1920_v25, %v2058_v3 }
 0x19e   :  { %v2063_v12 = vsel %vm366_vm7, %v362_v33, inf  ;;  %v567_v33 = vsub.f32 %v2479_v37, %v2478_v21 }
 0x1a0   :  { %v2065_v31 = vpop.xlane.xlu0 %379  ;;  %v585_v58 = vmul.f32 1.442695, %v567_v33 }
 0x1a1   :  { %vm381_vm8 = vcmp.eq.f32.partialorder %v1932_v15, %v2065_v31  ;;  %v565_v15 = vsub.f32 %v1595_v36, %v1603_v39 }
 0x1a2   :  { %v2070_v38 = vsel %vm381_vm8, %v377_v18, inf  ;;  %v2481_v18 = vld [vmem:[#allocation30_spill] sm:$0xff] }
 0x1a3   :  { %v581_v32 = vmul.f32 1.442695, %v565_v15  ;;  %v572_v41 = vsub.f32 %v2481_v18, %v2480_v11  ;;  %v2483_v15 = vld [vmem:[#allocation33_spill] sm:$0xff]  ;;  %vm556_vm13 = vcmp.gt.f32.partialorder %v2481_v18, -inf }
 0x1a4   :  { %v2072_v6 = vpop.xlane.xlu0 %394  ;;  %vm558_vm15 = vcmp.gt.f32.partialorder %v2483_v15, -inf }
 0x1a5   :  { %vm396_vm9 = vcmp.eq.f32.partialorder %v1935_v16, %v2072_v6  ;;  %1322 = vpow2.f32 %v581_v32  ;;  %v2474_v16 = vld [vmem:[#allocation23_spill] sm:$0xff] }
 0x1a6   :  { %v2077_v25 = vsel %vm396_vm9, %v392_v20, inf  ;;  %v568_v27 = vsub.f32 %v2475_v34, %v2474_v16  ;;  %v2485_v16 = vld [vmem:[#allocation39_spill] sm:$0xff] }
 0x1a7   :  { %vm560_vm5 = vcmp.gt.f32.partialorder %v2485_v16, -inf }
 0x1a8   :  { %v2079_v8 = vpop.xlane.xlu0 %409  ;;  %v587_v62 = vmul.f32 1.442695, %v568_v27 }
 0x1a9   :  { %vm411_vm10 = vcmp.eq.f32.partialorder %v1939_v55, %v2079_v8 }
 0x1aa   :  { %v2083_v52 = vsel %vm411_vm10, %v407_v53, inf  ;;  %v2482_v53 = vld [vmem:[#allocation38_spill] sm:$0xff] }
 0x1ab   :  { %v574_v32 = vsub.f32 %v2483_v15, %v2482_v53 }
 0x1af   :  { %v1323_v35 = vpop.eup %1322 }
 0x1b0   :  { %v707_v9 = vpop.permute.xlu0 %706  ;;  %v613_v45 = vsel %vm549_vm11, %v1323_v35, 0.0 }
 0x1b1   :  { %v724_v56 = vsub.f32 %v2473_v23, %v707_v9  ;;  %v773_v47 = vmul.f32 %v757_v60, %v613_v45  ;;  %v760_v23 = vld [vmem:[#allocation3 + $0x18] sm:$0xff]  ;;  %v762_v45 = vld [vmem:[#allocation3 + $0x28] sm:$0xff] }
 0x1b3   :  { %v755_v10 = vmul.f32 1.442695, %v724_v56  ;;  %v599_v56 = vmul.f32 1.442695, %v574_v32  ;;  %v759_v32 = vld [vmem:[#allocation3 + $0x10] sm:$0xff] }
 0x1b5   :  { %1324 = vpow2.f32 %v755_v10  ;;  %v2484_v10 = vld [vmem:[#allocation43_spill] sm:$0xff] }
 0x1b6   :  { %1326 = vpow2.f32 %v587_v62  ;;  %v576_v27 = vsub.f32 %v2485_v16, %v2484_v10 }
 0x1b7   :  { %1328 = vpow2.f32 %v591_v59 }
 0x1b8   :  { %1330 = vpow2.f32 %v585_v58  ;;  %v603_v54 = vmul.f32 1.442695, %v576_v27  ;;  %v764_v58 = vld [vmem:[#allocation3 + $0x38] sm:$0xff] }
 0x1bf   :  { %v1325_v55 = vpop.eup %1324 }
 0x1c0   :  { %v834_v39 = vsel %vm96_vm1, %v1325_v55, 0.0  ;;  %v1327_v20 = vpop.eup %1326  ;;  %vm552_vm1 = vcmp.gt.f32.partialorder %v2475_v34, -inf }
 0x1c1   :  { %835 = vadd.xlane.f32.xlu1 %v834_v39  ;;  %v616_v9 = vsel %vm552_vm1, %v1327_v20, 0.0  ;;  %v1329_v35 = vpop.eup %1328 }
 0x1c2   :  { %v776_v62 = vmul.f32 %v760_v23, %v616_v9  ;;  %v618_v60 = vsel %vm554_vm12, %v1329_v35, 0.0 }
 0x1c5   :  { %188 = vmin.xlane.f32.xlu1 %v1979_v29  ;;  %v595_v29 = vmul.f32 1.442695, %v572_v41 }
 0x1c6   :  { %v791_v13 = vpop.xlane.xlu1 %790 }
 0x1c7   :  { %v837_v24 = vadd.f32 %v791_v13, %v773_v47  ;;  %1332 = vpow2.f32 %v595_v29  ;;  %v778_v47 = vmul.f32 %v762_v45, %v618_v60  ;;  %v1331_v13 = vpop.eup %1330 }
 0x1c8   :  { %1334 = vpow2.f32 %v599_v56  ;;  %v615_v53 = vsel %vm551_vm14, %v1331_v13, 0.0 }
 0x1c9   :  { %853 = vst.msk [vmem:[#allocation3] sm:$0xff] %vm30_vm0, %v837_v24  ;;  %203 = vmin.xlane.f32.xlu1 %v1986_v61  ;;  %1336 = vpow2.f32 %v603_v54  ;;  %v758_v24 = vld [vmem:[#allocation3 + $0x8] sm:$0xff]  ;;  %v775_v23 = vmul.f32 %v759_v32, %v615_v53 }
 0x1cd   :  { %218 = vmin.xlane.f32.xlu1 %v1993_v19  ;;  %v2487_v19 = vld [vmem:[#allocation44_spill] sm:$0xff] }
 0x1ce   :  { %v578_v39 = vsub.f32 %v2487_v19, %v2486_v50  ;;  %v2489_v50 = vld [vmem:[#allocation56_spill] sm:$0xff]  ;;  %vm562_vm6 = vcmp.gt.f32.partialorder %v2487_v19, -inf }
 0x1d0   :  { %v607_v59 = vmul.f32 1.442695, %v578_v39 }
 0x1d1   :  { %233 = vmin.xlane.f32.xlu1 %v2000_v28  ;;  %v1333_v21 = vpop.eup %1332 }
 0x1d2   :  { %v800_v61 = vpop.xlane.xlu1 %799  ;;  %1338 = vpow2.f32 %v607_v59  ;;  %v620_v20 = vsel %vm556_vm13, %v1333_v21, 0.0  ;;  %v768_v59 = vld [vmem:[#allocation3 + $0x58] sm:$0xff] }
 0x1d3   :  { %v840_v55 = vadd.f32 %v800_v61, %v776_v62  ;;  %v780_v9 = vmul.f32 %v764_v58, %v620_v20  ;;  %v766_v62 = vld [vmem:[#allocation3 + $0x48] sm:$0xff]  ;;  %v765_v58 = vld [vmem:[#allocation3 + $0x40] sm:$0xff] }
 0x1d4   :  { %v770_v20 = vld [vmem:[#allocation3 + $0x68] sm:$0xff] }
 0x1d5   :  { %856 = vst.msk [vmem:[#allocation3 + $0x18] sm:$0xff] %vm30_vm0, %v840_v55  ;;  %248 = vmin.xlane.f32.xlu1 %v2007_v48  ;;  %v2488_v48 = vld [vmem:[#allocation55_spill] sm:$0xff] }
 0x1d6   :  { %v774_v11 = vmul.f32 %v758_v24, %v2488_v48 }
 0x1d9   :  { %263 = vmin.xlane.f32.xlu1 %v2014_v63  ;;  %v1335_v63 = vpop.eup %1334 }
 0x1da   :  { %v806_v28 = vpop.xlane.xlu1 %805  ;;  %v622_v27 = vsel %vm558_vm15, %v1335_v63, 0.0  ;;  %v1337_v61 = vpop.eup %1336 }
 0x1db   :  { %v842_v33 = vadd.f32 %v806_v28, %v778_v47  ;;  %v782_v54 = vmul.f32 %v766_v62, %v622_v27  ;;  %v624_v45 = vsel %vm560_vm5, %v1337_v61, 0.0  ;;  %v763_v47 = vld [vmem:[#allocation3 + $0x30] sm:$0xff] }
 0x1dc   :  { %v1339_v13 = vpop.eup %1338  ;;  %v784_v21 = vmul.f32 %v768_v59, %v624_v45  ;;  %v2492_v62 = vld [vmem:[#allocation59_spill] sm:$0xff] }
 0x1dd   :  { %858 = vst.msk [vmem:[#allocation3 + $0x28] sm:$0xff] %vm30_vm0, %v842_v33  ;;  %278 = vmin.xlane.f32.xlu1 %v2021_v7  ;;  %v794_v41 = vpop.xlane.xlu0 %793  ;;  %v761_v7 = vld [vmem:[#allocation3 + $0x20] sm:$0xff] }
 0x1de   :  { %v838_v29 = vadd.f32 %v794_v41, %v774_v11  ;;  %v777_v39 = vmul.f32 %v761_v7, %v2489_v50  ;;  %v2490_v33 = vld [vmem:[#allocation57_spill] sm:$0xff]  ;;  %v626_v41 = vsel %vm562_vm6, %v1339_v13, 0.0  ;;  %v2496_v13 = vld [vmem:[#allocation52_spill] sm:$0xff]  ;;  %vm952_vm6 = vcmask 195712  }
 0x1df   :  { %v779_v48 = vmul.f32 %v763_v47, %v2490_v33  ;;  %v786_v63 = vmul.f32 %v770_v20, %v626_v41  ;;  %v2495_v47 = vld [vmem:[#allocation53_spill] sm:$0xff]  ;;  %vm564_vm7 = vcmp.gt.f32.partialorder %v2496_v13, -inf }
 0x1e0   :  { %854 = vst.msk [vmem:[#allocation3 + $0x8] sm:$0xff] %vm30_vm0, %v838_v29  ;;  %v2491_v29 = vld [vmem:[#allocation58_spill] sm:$0xff]  ;;  %v772_v33 = vld [vmem:[#allocation3 + $0x78] sm:$0xff] }
 0x1e1   :  { %293 = vmin.xlane.f32.xlu1 %v2028_v51  ;;  %v797_v10 = vpop.xlane.xlu0 %796 }
 0x1e2   :  { %v812_v56 = vpop.xlane.xlu1 %811  ;;  %v839_v55 = vadd.f32 %v797_v10, %v775_v23  ;;  %v767_v10 = vld [vmem:[#allocation3 + $0x50] sm:$0xff] }
 0x1e3   :  { %v844_v35 = vadd.f32 %v812_v56, %v780_v9  ;;  %v781_v9 = vmul.f32 %v765_v58, %v2491_v29  ;;  %v783_v7 = vmul.f32 %v767_v10, %v2492_v62  ;;  %v468_v58 = vld [vmem:[#allocation4] sm:$0xff] }
 0x1e4   :  { %855 = vst.msk [vmem:[#allocation3 + $0x10] sm:$0xff] %vm30_vm0, %v839_v55 }
 0x1e5   :  { %860 = vst.msk [vmem:[#allocation3 + $0x38] sm:$0xff] %vm30_vm0, %v844_v35  ;;  %308 = vmin.xlane.f32.xlu1 %v2035_v57  ;;  %v803_v51 = vpop.xlane.xlu0 %802  ;;  %v769_v35 = vld [vmem:[#allocation3 + $0x60] sm:$0xff] }
 0x1e6   :  { %v818_v60 = vpop.xlane.xlu1 %817  ;;  %v841_v24 = vadd.f32 %v803_v51, %v777_v39  ;;  %v771_v39 = vld [vmem:[#allocation3 + $0x70] sm:$0xff]  ;;  %v2494_v51 = vld [vmem:[#allocation61_spill] sm:$0xff] }
 0x1e7   :  { %v846_v28 = vadd.f32 %v818_v60, %v782_v54  ;;  %v2493_v54 = vld [vmem:[#allocation60_spill] sm:$0xff]  ;;  %v787_v45 = vmul.f32 %v771_v39, %v2494_v51 }
 0x1e8   :  { %857 = vst.msk [vmem:[#allocation3 + $0x20] sm:$0xff] %vm30_vm0, %v841_v24  ;;  %v785_v50 = vmul.f32 %v769_v35, %v2493_v54 }
 0x1e9   :  { %862 = vst.msk [vmem:[#allocation3 + $0x48] sm:$0xff] %vm30_vm0, %v846_v28  ;;  %323 = vmin.xlane.f32.xlu1 %v2042_v43  ;;  %v809_v57 = vpop.xlane.xlu0 %808 }
 0x1ea   :  { %v824_v11 = vpop.xlane.xlu1 %823  ;;  %v843_v32 = vadd.f32 %v809_v57, %v779_v48 }
 0x1eb   :  { %v848_v53 = vadd.f32 %v824_v11, %v784_v21  ;;  %v191_v11 = vcvt.f32.s32 %v1974_v40  ;;  %v469_v40 = vld [vmem:[#allocation4 + $0x8] sm:$0xff] }
 0x1ec   :  { %859 = vst.msk [vmem:[#allocation3 + $0x30] sm:$0xff] %vm30_vm0, %v843_v32  ;;  %v2497_v32 = vld [vmem:[#allocation17_spill] sm:$0xff] }
 0x1ed   :  { %864 = vst.msk [vmem:[#allocation3 + $0x58] sm:$0xff] %vm30_vm0, %v848_v53  ;;  %338 = vmin.xlane.f32.xlu1 %v2049_v0  ;;  %v815_v56 = vpop.xlane.xlu0 %814  ;;  %v192_v41 = vshll.u32 %v191_v11, 16  ;;  %vm452_vm8 = vcmp.gt.f32.partialorder %v2497_v32, %v1595_v36  ;;  %v470_v36 = vld [vmem:[#allocation4 + $0x10] sm:$0xff]  ;;  %v296_v32 = vcvt.f32.s32 %v2023_v4  ;;  %v475_v4 = vld [vmem:[#allocation4 + $0x38] sm:$0xff] }
 0x1ee   :  { %v830_v23 = vpop.xlane.xlu1 %829  ;;  %v845_v43 = vadd.f32 %v815_v56, %v781_v9  ;;  %v221_v9 = vcvt.f32.s32 %v1988_v42  ;;  %v2500_v42 = vld [vmem:[#allocation16_spill] sm:$0xff] }
 0x1ef   :  { %v850_v27 = vadd.f32 %v830_v23, %v786_v63  ;;  %vm454_vm10 = vcmp.gt.f32.partialorder %v2500_v42, %v2479_v37 }
 0x1f0   :  { %861 = vst.msk [vmem:[#allocation3 + $0x40] sm:$0xff] %vm30_vm0, %v845_v43  ;;  %v2499_v43 = vld [vmem:[#allocation22_spill] sm:$0xff]  ;;  %v222_v62 = vshll.u32 %v221_v9, 16 }
 0x1f1   :  { %866 = vst.msk [vmem:[#allocation3 + $0x68] sm:$0xff] %vm30_vm0, %v850_v27  ;;  %353 = vmin.xlane.f32.xlu1 %v2056_v44  ;;  %v821_v61 = vpop.xlane.xlu0 %820  ;;  %v2498_v27 = vld [vmem:[#allocation19_spill] sm:$0xff] }
 0x1f2   :  { %v847_v55 = vadd.f32 %v821_v61, %v783_v7  ;;  %vm453_vm9 = vcmp.gt.f32.partialorder %v2499_v43, %v2498_v27  ;;  %v236_v7 = vcvt.f32.s32 %v1995_v22  ;;  %v297_v27 = vshll.u32 %v296_v32, 16 }
 0x1f3   :  { %v311_v43 = vcvt.f32.s32 %v2030_v2  ;;  %v476_v2 = vld [vmem:[#allocation4 + $0x40] sm:$0xff] }
 0x1f4   :  { %863 = vst.msk [vmem:[#allocation3 + $0x50] sm:$0xff] %vm30_vm0, %v847_v55 }
 0x1f5   :  { %368 = vmin.xlane.f32.xlu1 %v2063_v12  ;;  %v827_v0 = vpop.xlane.xlu0 %826  ;;  %v580_v12 = vsub.f32 %v2496_v13, %v2495_v47 }
 0x1f6   :  { %v849_v60 = vadd.f32 %v827_v0, %v785_v50  ;;  %v237_v50 = vshll.u32 %v236_v7, 16  ;;  %v251_v0 = vcvt.f32.s32 %v2002_v1  ;;  %v472_v1 = vld [vmem:[#allocation4 + $0x20] sm:$0xff] }
 0x1f7   :  { %v611_v28 = vmul.f32 1.442695, %v580_v12  ;;  %v266_v12 = vcvt.f32.s32 %v2009_v46  ;;  %v473_v46 = vld [vmem:[#allocation4 + $0x28] sm:$0xff] }
 0x1f8   :  { %865 = vst.msk [vmem:[#allocation3 + $0x60] sm:$0xff] %vm30_vm0, %v849_v60  ;;  %v252_v47 = vshll.u32 %v251_v0, 16 }
 0x1f9   :  { %383 = vmin.xlane.f32.xlu1 %v2070_v38  ;;  %v833_v59 = vpop.xlane.xlu0 %832  ;;  %1340 = vpow2.f32 %v611_v28  ;;  %v267_v11 = vshll.u32 %v266_v12, 16  ;;  %v2510_v12 = vld [vmem:[#allocation36_spill] sm:$0xff] }
 0x1fa   :  { %v851_v44 = vadd.f32 %v833_v59, %v787_v45  ;;  %v471_v45 = vld [vmem:[#allocation4 + $0x18] sm:$0xff]  ;;  %vm461_vm15 = vcmp.gt.f32.partialorder %v2510_v12, %v2483_v15 }
 0x1fb   :  { %v2501_v59 = vld [vmem:[#allocation21_spill] sm:$0xff] }
 0x1fc   :  { %867 = vst.msk [vmem:[#allocation3 + $0x70] sm:$0xff] %vm30_vm0, %v851_v44  ;;  %vm455_vm11 = vcmp.gt.f32.partialorder %v2501_v59, %v2475_v34 }
 0x1fd   :  { %398 = vmin.xlane.f32.xlu1 %v2077_v25 }
 0x201   :  { %413 = vmin.xlane.f32.xlu1 %v2083_v52  ;;  %v206_v52 = vcvt.f32.s32 %v1981_v26 }
 0x203   :  { %v1341_v24 = vpop.eup %1340  ;;  %v207_v29 = vshll.u32 %v206_v52, 16 }
 0x204   :  { %v628_v21 = vsel %vm564_vm7, %v1341_v24, 0.0  ;;  %vm959_vm7 = vcmask 261312  }
 0x205   :  { %v788_v48 = vmul.f32 %v772_v33, %v628_v21  ;;  %v2502_v33 = vld [vmem:[#allocation24_spill] sm:$0xff] }
 0x24e   :  { %v836_v38 = vpop.xlane.xlu1 %835 }
 0x24f   :  { %v852_v57 = vadd.f32 %v836_v38, %v788_v48  ;;  %v2503_v48 = vld [vmem:[#allocation27_spill] sm:$0xff] }
 0x250   :  { %vm456_vm1 = vcmp.gt.f32.partialorder %v2503_v48, %v2502_v33  ;;  %v478_v33 = vld [vmem:[#allocation4 + $0x50] sm:$0xff] }
 0x251   :  { %868 = vst.msk [vmem:[#allocation3 + $0x78] sm:$0xff] %vm30_vm0, %v852_v57  ;;  %v281_v57 = vcvt.f32.s32 %v2016_v49  ;;  %v474_v49 = vld [vmem:[#allocation4 + $0x30] sm:$0xff] }
 0x252   :  { %v189_v25 = vpop.xlane.xlu1 %188 }
 0x253   :  { %v190_v20 = vcvt.f32.s32 %v189_v25 }
 0x255   :  { %v193_v53 = vadd.s32 %v192_v41, %v190_v20  ;;  %v2504_v20 = vld [vmem:[#allocation26_spill] sm:$0xff] }
 0x256   :  { %v204_v63 = vpop.xlane.xlu1 %203  ;;  %vm457_vm12 = vcmp.gt.f32.partialorder %v2504_v20, %v2477_v17  ;;  %v2513_v20 = vld [vmem:[#allocation41_spill] sm:$0xff] }
 0x257   :  { %v484_v23 = vsel %vm452_vm8, %v193_v53, %v468_v58  ;;  %v205_v56 = vcvt.f32.s32 %v204_v63  ;;  %v282_v53 = vshll.u32 %v281_v57, 16  ;;  %v371_v57 = vcvt.f32.s32 %v2058_v3 }
 0x258   :  { %501 = vst.msk [vmem:[#allocation4] sm:$0xff] %vm30_vm0, %v484_v23  ;;  %vm966_vm8 = vcmask 326912  }
 0x259   :  { %v208_v10 = vadd.s32 %v207_v29, %v205_v56  ;;  %v2505_v56 = vld [vmem:[#allocation29_spill] sm:$0xff]  ;;  %v372_v32 = vshll.u32 %v371_v57, 16 }
 0x25a   :  { %v219_v26 = vpop.xlane.xlu1 %218  ;;  %v1058_v57 = vld [vmem:[#allocation3 + $0x60] sm:$0xff] }
 0x25b   :  { %v485_v61 = vsel %vm453_vm9, %v208_v10, %v469_v40  ;;  %v220_v35 = vcvt.f32.s32 %v219_v26  ;;  %v2506_v40 = vld [vmem:[#allocation32_spill] sm:$0xff]  ;;  %vm973_vm9 = vcmask 392512  }
 0x25c   :  { %502 = vst.msk [vmem:[#allocation4 + $0x8] sm:$0xff] %vm30_vm0, %v485_v61  ;;  %vm458_vm13 = vcmp.gt.f32.partialorder %v2506_v40, %v2505_v56  ;;  %v2507_v61 = vld [vmem:[#allocation31_spill] sm:$0xff]  ;;  %v1049_v40 = vld [vmem:[#allocation3 + $0x18] sm:$0xff] }
 0x25d   :  { %v223_v55 = vadd.s32 %v222_v62, %v220_v35  ;;  %vm459_vm14 = vcmp.gt.f32.partialorder %v2507_v61, %v2481_v18  ;;  %v2516_v61 = vld [vmem:[#allocation46_spill] sm:$0xff] }
 0x25e   :  { %v234_v54 = vpop.xlane.xlu1 %233 }
 0x25f   :  { %v486_v39 = vsel %vm454_vm10, %v223_v55, %v470_v36  ;;  %v235_v60 = vcvt.f32.s32 %v234_v54  ;;  %v872_v51 = vld [vmem:[#allocation4] sm:$0xff]  ;;  %v312_v36 = vshll.u32 %v311_v43, 16  ;;  %v326_v55 = vcvt.f32.s32 %v2037_v30  ;;  %v477_v30 = vld [vmem:[#allocation4 + $0x48] sm:$0xff] }
 0x260   :  { %503 = vst.msk [vmem:[#allocation4 + $0x10] sm:$0xff] %vm30_vm0, %v486_v39  ;;  %889 = vperm.xlu0 %1276, %v872_v51   ;;  %v341_v51 = vcvt.f32.s32 %v2044_v14  ;;  %vm980_vm10 = vcmask 458112  }
 0x261   :  { %v238_v22 = vadd.s32 %v237_v50, %v235_v60  ;;  %v327_v60 = vshll.u32 %v326_v55, 16 }
 0x262   :  { %v249_v44 = vpop.xlane.xlu1 %248 }
 0x263   :  { %v487_v37 = vsel %vm455_vm11, %v238_v22, %v471_v45  ;;  %v250_v28 = vcvt.f32.s32 %v249_v44  ;;  %v873_v24 = vld [vmem:[#allocation4 + $0x8] sm:$0xff]  ;;  %v1053_v45 = vld [vmem:[#allocation3 + $0x38] sm:$0xff]  ;;  %vm987_vm11 = vcmask 523712  }
 0x264   :  { %504 = vst.msk [vmem:[#allocation4 + $0x18] sm:$0xff] %vm30_vm0, %v487_v37  ;;  %892 = vperm.xlu1 %1277, %v873_v24   ;;  %v356_v24 = vcvt.f32.s32 %v2051_v5  ;;  %v479_v5 = vld [vmem:[#allocation4 + $0x58] sm:$0xff] }
 0x265   :  { %v253_v21 = vadd.s32 %v252_v47, %v250_v28  ;;  %v342_v28 = vshll.u32 %v341_v51, 16  ;;  %v2518_v51 = vld [vmem:[#allocation50_spill] sm:$0xff] }
 0x266   :  { %v264_v38 = vpop.xlane.xlu1 %263 }
 0x267   :  { %v488_v34 = vsel %vm456_vm1, %v253_v21, %v472_v1  ;;  %v265_v25 = vcvt.f32.s32 %v264_v38  ;;  %v874_v41 = vld [vmem:[#allocation4 + $0x10] sm:$0xff]  ;;  %vm994_vm1 = vcmask 589312  }
 0x268   :  { %505 = vst.msk [vmem:[#allocation4 + $0x20] sm:$0xff] %vm30_vm0, %v488_v34  ;;  %895 = vperm.xlu1 %1277, %v874_v41  }
 0x269   :  { %v268_v52 = vadd.s32 %v267_v11, %v265_v25  ;;  %v357_v11 = vshll.u32 %v356_v24, 16  ;;  %v1059_v25 = vld [vmem:[#allocation3 + $0x68] sm:$0xff] }
 0x26a   :  { %v279_v58 = vpop.xlane.xlu1 %278 }
 0x26b   :  { %v489_v63 = vsel %vm457_vm12, %v268_v52, %v473_v46  ;;  %v280_v29 = vcvt.f32.s32 %v279_v58  ;;  %v875_v9 = vld [vmem:[#allocation4 + $0x18] sm:$0xff]  ;;  %vm1001_vm12 = vcmask 654912  }
 0x26c   :  { %506 = vst.msk [vmem:[#allocation4 + $0x28] sm:$0xff] %vm30_vm0, %v489_v63  ;;  %898 = vperm.xlu0 %1276, %v875_v9   ;;  %v386_v63 = vcvt.f32.s32 %v2065_v31 }
 0x26d   :  { %v283_v23 = vadd.s32 %v282_v53, %v280_v29  ;;  %v1047_v53 = vld [vmem:[#allocation3 + $0x8] sm:$0xff] }
 0x26e   :  { %v294_v10 = vpop.xlane.xlu1 %293  ;;  %1342 = vrcp.f32 %v1047_v53  ;;  %v1061_v53 = vld [vmem:[#allocation3 + $0x78] sm:$0xff] }
 0x26f   :  { %v490_v17 = vsel %vm458_vm13, %v283_v23, %v474_v49  ;;  %v295_v26 = vcvt.f32.s32 %v294_v10  ;;  %v876_v62 = vld [vmem:[#allocation4 + $0x20] sm:$0xff]  ;;  %v387_v10 = vshll.u32 %v386_v63, 16  ;;  %1344 = vrcp.f32 %v1049_v40 }
 0x270   :  { %507 = vst.msk [vmem:[#allocation4 + $0x30] sm:$0xff] %vm30_vm0, %v490_v17  ;;  %901 = vperm.xlu1 %1277, %v876_v62   ;;  %v480_v49 = vld [vmem:[#allocation4 + $0x60] sm:$0xff]  ;;  %v481_v62 = vld [vmem:[#allocation4 + $0x68] sm:$0xff]  ;;  %vm1008_vm13 = vcmask 720512  }
 0x271   :  { %v298_v7 = vadd.s32 %v297_v27, %v295_v26  ;;  %v401_v27 = vcvt.f32.s32 %v2072_v6  ;;  %v416_v6 = vcvt.f32.s32 %v2079_v8 }
 0x272   :  { %v309_v35 = vpop.xlane.xlu1 %308 }
 0x273   :  { %v491_v42 = vsel %vm459_vm14, %v298_v7, %v475_v4  ;;  %v310_v54 = vcvt.f32.s32 %v309_v35  ;;  %v877_v50 = vld [vmem:[#allocation4 + $0x28] sm:$0xff]  ;;  %v1046_v4 = vld [vmem:[#allocation3] sm:$0xff]  ;;  %v402_v55 = vshll.u32 %v401_v27, 16  ;;  %vm1015_vm14 = vcmask 786112  }
 0x274   :  { %508 = vst.msk [vmem:[#allocation4 + $0x38] sm:$0xff] %vm30_vm0, %v491_v42  ;;  %904 = vperm.xlu0 %1276, %v877_v50   ;;  %1346 = vrcp.f32 %v1046_v4 }
 0x275   :  { %v313_v0 = vadd.s32 %v312_v36, %v310_v54  ;;  %v1051_v36 = vld [vmem:[#allocation3 + $0x28] sm:$0xff] }
 0x276   :  { %v324_v39 = vpop.xlane.xlu1 %323  ;;  %1348 = vrcp.f32 %v1051_v36  ;;  %v2520_v36 = vlaneseq }
 0x277   :  { %v492_v18 = vsel %vm460_vm2, %v313_v0, %v476_v2  ;;  %v325_v59 = vcvt.f32.s32 %v324_v39  ;;  %v878_v44 = vld [vmem:[#allocation4 + $0x30] sm:$0xff]  ;;  %vm463_vm2 = vcmp.gt.f32.partialorder %v2513_v20, %v2485_v16 }
 0x278   :  { %509 = vst.msk [vmem:[#allocation4 + $0x40] sm:$0xff] %vm30_vm0, %v492_v18  ;;  %907 = vperm.xlu1 %1277, %v878_v44   ;;  %v482_v2 = vld [vmem:[#allocation4 + $0x70] sm:$0xff]  ;;  %v1343_v22 = vpop.eup %1342  ;;  %v417_v18 = vshll.u32 %v416_v6, 16 }
 0x279   :  { %v328_v47 = vadd.s32 %v327_v60, %v325_v59  ;;  %v1048_v0 = vld [vmem:[#allocation3 + $0x10] sm:$0xff]  ;;  %v2517_v60 = vld [vmem:[#allocation49_spill] sm:$0xff]  ;;  %v1345_v24 = vpop.eup %1344 }
 0x27a   :  { %v339_v37 = vpop.xlane.xlu1 %338  ;;  %1350 = vrcp.f32 %v1048_v0 }
 0x27b   :  { %v493_v1 = vsel %vm461_vm15, %v328_v47, %v477_v30  ;;  %v340_v14 = vcvt.f32.s32 %v339_v37  ;;  %v879_v21 = vld [vmem:[#allocation4 + $0x38] sm:$0xff]  ;;  %v1050_v47 = vld [vmem:[#allocation3 + $0x20] sm:$0xff]  ;;  %1352 = vrcp.f32 %v1053_v45  ;;  %v2519_v37 = vld [vmem:[#allocation51_spill] sm:$0xff]  ;;  %vm1022_vm15 = vcmask 851712  }
 0x27c   :  { %510 = vst.msk [vmem:[#allocation4 + $0x48] sm:$0xff] %vm30_vm0, %v493_v1  ;;  %910 = vperm.xlu0 %1276, %v879_v21   ;;  %v483_v30 = vld [vmem:[#allocation4 + $0x78] sm:$0xff]  ;;  %vm467_vm5 = vcmp.gt.f32.partialorder %v2519_v37, %v2496_v13  ;;  %1354 = vrcp.f32 %v1050_v47  ;;  %v1052_v21 = vld [vmem:[#allocation3 + $0x30] sm:$0xff] }
 0x27d   :  { %v343_v48 = vadd.s32 %v342_v28, %v340_v14  ;;  %v1055_v28 = vld [vmem:[#allocation3 + $0x48] sm:$0xff] }
 0x27e   :  { %v354_v38 = vpop.xlane.xlu1 %353  ;;  %1356 = vrcp.f32 %v1055_v28 }
 0x27f   :  { %v494_v15 = vsel %vm462_vm3, %v343_v48, %v478_v33  ;;  %v355_v41 = vcvt.f32.s32 %v354_v38  ;;  %v880_v46 = vld [vmem:[#allocation4 + $0x40] sm:$0xff]  ;;  %vm465_vm3 = vcmp.gt.f32.partialorder %v2516_v61, %v2487_v19  ;;  %v1347_v33 = vpop.eup %1346  ;;  %v1057_v48 = vld [vmem:[#allocation3 + $0x58] sm:$0xff]  ;;  %1358 = vrcp.f32 %v1052_v21 }
 0x280   :  { %511 = vst.msk [vmem:[#allocation4 + $0x50] sm:$0xff] %vm30_vm0, %v494_v15  ;;  %913 = vperm.xlu1 %1277, %v880_v46   ;;  %v1349_v38 = vpop.eup %1348  ;;  %1360 = vrcp.f32 %v1057_v48 }
 0x281   :  { %v358_v52 = vadd.s32 %v357_v11, %v355_v41  ;;  %v1054_v11 = vld [vmem:[#allocation3 + $0x40] sm:$0xff]  ;;  %v1056_v41 = vld [vmem:[#allocation3 + $0x50] sm:$0xff] }
 0x282   :  { %v369_v58 = vpop.xlane.xlu1 %368  ;;  %1362 = vrcp.f32 %v1054_v11 }
 0x283   :  { %v495_v3 = vsel %vm463_vm2, %v358_v52, %v479_v5  ;;  %v370_v29 = vcvt.f32.s32 %v369_v58  ;;  %v881_v9 = vld [vmem:[#allocation4 + $0x48] sm:$0xff]  ;;  %1364 = vrcp.f32 %v1058_v57  ;;  %v1060_v52 = vld [vmem:[#allocation3 + $0x70] sm:$0xff]  ;;  %vm1029_vm2 = vcmask 917312  }
 0x284   :  { %512 = vst.msk [vmem:[#allocation4 + $0x58] sm:$0xff] %vm30_vm0, %v495_v3  ;;  %916 = vperm.xlu0 %1276, %v881_v9   ;;  %v1351_v13 = vpop.eup %1350  ;;  %1366 = vrcp.f32 %v1059_v25 }
 0x285   :  { %v373_v23 = vadd.s32 %v372_v32, %v370_v29  ;;  %v1353_v34 = vpop.eup %1352  ;;  %1368 = vrcp.f32 %v1056_v41 }
 0x286   :  { %v384_v56 = vpop.xlane.xlu1 %383  ;;  %v1355_v15 = vpop.eup %1354  ;;  %1370 = vrcp.f32 %v1060_v52 }
 0x287   :  { %v496_v17 = vsel %vm464_vm4, %v373_v23, %v480_v49  ;;  %v385_v26 = vcvt.f32.s32 %v384_v56  ;;  %v882_v31 = vld [vmem:[#allocation4 + $0x50] sm:$0xff]  ;;  %vm466_vm4 = vcmp.gt.f32.partialorder %v2518_v51, %v2517_v60  ;;  %1372 = vrcp.f32 %v1061_v53 }
 0x288   :  { %513 = vst.msk [vmem:[#allocation4 + $0x60] sm:$0xff] %vm30_vm0, %v496_v17  ;;  %919 = vperm.xlu1 %1277, %v882_v31   ;;  %v1357_v46 = vpop.eup %1356 }
 0x289   :  { %v388_v7 = vadd.s32 %v387_v10, %v385_v26  ;;  %v1359_v5 = vpop.eup %1358 }
 0x28a   :  { %v399_v35 = vpop.xlane.xlu1 %398  ;;  %v1361_v20 = vpop.eup %1360 }
 0x28b   :  { %v497_v42 = vsel %vm465_vm3, %v388_v7, %v481_v62  ;;  %v400_v54 = vcvt.f32.s32 %v399_v35  ;;  %v883_v50 = vld [vmem:[#allocation4 + $0x58] sm:$0xff]  ;;  %vm1036_vm3 = vcmask 982912  }
 0x28c   :  { %514 = vst.msk [vmem:[#allocation4 + $0x68] sm:$0xff] %vm30_vm0, %v497_v42  ;;  %922 = vperm.xlu0 %1276, %v883_v50   ;;  %v1363_v58 = vpop.eup %1362 }
 0x28d   :  { %v403_v39 = vadd.s32 %v402_v55, %v400_v54  ;;  %v1365_v32 = vpop.eup %1364  ;;  %v2247_v55 = vshrl.u32 %v2520_v36, 7  ;;  %v2521_v54 = vld [vmem:[#allocation54_spill] sm:$0xff] }
 0x28e   :  { %v414_v19 = vpop.xlane.xlu1 %413  ;;  %v1367_v63 = vpop.eup %1366  ;;  %v940_v50 = vadd.s32 4294967288, %v2521_v54  ;;  %v989_v21 = vadd.s32 4294967232, %v2521_v54  ;;  %v996_v11 = vadd.s32 4294967224, %v2521_v54  ;;  %v1010_v52 = vadd.s32 4294967208, %v2521_v54 }
 0x28f   :  { %v498_v59 = vsel %vm466_vm4, %v403_v39, %v482_v2  ;;  %v415_v8 = vcvt.f32.s32 %v414_v19  ;;  %v884_v44 = vld [vmem:[#allocation4 + $0x60] sm:$0xff]  ;;  %v1369_v3 = vpop.eup %1368  ;;  %v947_v2 = vadd.s32 4294967280, %v2521_v54  ;;  %v2255_v0 = vsub.s32 %v2521_v54, %v2247_v55 }
 0x290   :  { %515 = vst.msk [vmem:[#allocation4 + $0x70] sm:$0xff] %vm30_vm0, %v498_v59  ;;  %925 = vperm.xlu1 %1277, %v884_v44   ;;  %1114 = vperm.xlu0 %1276, %v1343_v22   ;;  %v1371_v29 = vpop.eup %1370  ;;  %v2258_v51 = vsub.s32 %v940_v50, %v2247_v55  ;;  %v954_v19 = vadd.s32 4294967272, %v2521_v54  ;;  %vm1043_vm4 = vcmask 1048512  }
 0x291   :  { %v418_v12 = vadd.s32 %v417_v18, %v415_v8  ;;  %v1373_v49 = vpop.eup %1372  ;;  %v2263_v22 = vsub.s32 %v947_v2, %v2247_v55  ;;  %v961_v18 = vadd.s32 4294967264, %v2521_v54 }
 0x292   :  { %v957_v47 = vsub.s32 %v954_v19, %v2247_v55 }
 0x293   :  { %v499_v1 = vsel %vm467_vm5, %v418_v12, %v483_v30  ;;  %v885_v14 = vld [vmem:[#allocation4 + $0x68] sm:$0xff]  ;;  %v968_v12 = vadd.s32 4294967256, %v2521_v54  ;;  %v964_v28 = vsub.s32 %v961_v18, %v2247_v55 }
 0x294   :  { %516 = vst.msk [vmem:[#allocation4 + $0x78] sm:$0xff] %vm30_vm0, %v499_v1  ;;  %928 = vperm.xlu1 %1277, %v885_v14   ;;  %1120 = vperm.xlu0 %1276, %v1345_v24   ;;  %vm945_vm0 = vcmask 130112   ;;  %v975_v24 = vadd.s32 4294967248, %v2521_v54  ;;  %v982_v1 = vadd.s32 4294967240, %v2521_v54 }
 0x295   :  { %v971_v57 = vsub.s32 %v968_v12, %v2247_v55 }
 0x296   :  { %v985_v41 = vsub.s32 %v982_v1, %v2247_v55 }
 0x297   :  { %v886_v9 = vld [vmem:[#allocation4 + $0x70] sm:$0xff] }
 0x298   :  { %1111 = vperm.xlu1 %1277, %v1347_v33   ;;  %1126 = vperm.xlu0 %1276, %v1349_v38  }
 0x29b   :  { %v887_v23 = vld [vmem:[#allocation4 + $0x78] sm:$0xff] }
 0x29c   :  { %1117 = vperm.xlu1 %1277, %v1351_v13   ;;  %1132 = vperm.xlu0 %1276, %v1353_v34   ;;  %v1003_v34 = vadd.s32 4294967216, %v2521_v54 }
 0x2a0   :  { %1123 = vperm.xlu1 %1277, %v1355_v15   ;;  %1138 = vperm.xlu0 %1276, %v1357_v46   ;;  %v978_v15 = vsub.s32 %v975_v24, %v2247_v55 }
 0x2a4   :  { %1129 = vperm.xlu1 %1277, %v1359_v5   ;;  %1144 = vperm.xlu0 %1276, %v1361_v20   ;;  %v992_v5 = vsub.s32 %v989_v21, %v2247_v55 }
 0x2a8   :  { %1135 = vperm.xlu1 %1277, %v1363_v58   ;;  %1147 = vperm.xlu0 %1276, %v1365_v32  }
 0x2ac   :  { %1141 = vperm.xlu1 %1277, %v1369_v3   ;;  %1150 = vperm.xlu0 %1276, %v1367_v63   ;;  %v999_v63 = vsub.s32 %v996_v11, %v2247_v55 }
 0x2b0   :  { %931 = vperm.xlu1 %1277, %v886_v9   ;;  %1153 = vperm.xlu0 %1276, %v1371_v29   ;;  %v1006_v9 = vsub.s32 %v1003_v34, %v2247_v55 }
 0x2b4   :  { %934 = vperm.xlu1 %1277, %v887_v23   ;;  %1156 = vperm.xlu0 %1276, %v1373_v49   ;;  %v1017_v49 = vadd.s32 4294967200, %v2521_v54 }
 0x2df   :  { %v2222_v40 = vpop.permute.xlu0 %889 }
 0x2e3   :  { %v2220_v56 = vpop.permute.xlu1 %892 }
 0x2e4   :  { %v944_v32 = vrot.slane %v2220_v56, %v2258_v51  ;;  %v1024_v56 = vadd.s32 4294967192, %v2521_v54 }
 0x2e7   :  { %v2224_v10 = vpop.permute.xlu1 %895 }
 0x2e8   :  { %v951_v29 = vrot.slane %v2224_v10, %v2263_v22  ;;  %v1013_v10 = vsub.s32 %v1010_v52, %v2247_v55 }
 0x2eb   :  { %v2226_v27 = vpop.permute.xlu0 %898 }
 0x2ec   :  { %v958_v36 = vrot.slane %v2226_v27, %v957_v47  ;;  %v1031_v27 = vadd.s32 4294967184, %v2521_v54 }
 0x2ef   :  { %v2228_v16 = vpop.permute.xlu1 %901 }
 0x2f0   :  { %v965_v50 = vrot.slane %v2228_v16, %v964_v28  ;;  %v1020_v16 = vsub.s32 %v1017_v49, %v2247_v55 }
 0x2f3   :  { %v2230_v43 = vpop.permute.xlu0 %904 }
 0x2f7   :  { %v2232_v17 = vpop.permute.xlu1 %907 }
 0x2fb   :  { %v2234_v26 = vpop.permute.xlu0 %910 }
 0x2ff   :  { %v2236_v31 = vpop.permute.xlu1 %913 }
 0x303   :  { %v2238_v62 = vpop.permute.xlu0 %916 }
 0x304   :  { %v1000_v24 = vrot.slane %v2238_v62, %v999_v63 }
 0x307   :  { %v2240_v4 = vpop.permute.xlu1 %919 }
 0x308   :  { %v1007_v21 = vrot.slane %v2240_v4, %v1006_v9 }
 0x30b   :  { %v2242_v7 = vpop.permute.xlu0 %922 }
 0x30f   :  { %v2244_v61 = vpop.permute.xlu1 %925  ;;  %v1115_v35 = vpop.permute.xlu0 %1114 }
 0x310   :  { %v1165_v59 = vrot.slane %v1115_v35, %v2258_v51  ;;  %v939_v35 = vrot.slane %v2222_v40, %v2255_v0  ;;  %v972_v40 = vrot.slane %v2230_v43, %v971_v57  ;;  %v1021_v62 = vrot.slane %v2244_v61, %v1020_v16 }
 0x312   :  { %v946_v51 = vsel %vm945_vm0, %v944_v32, %v939_v35 }
 0x313   :  { %v2249_v6 = vpop.permute.xlu1 %928  ;;  %v1121_v42 = vpop.permute.xlu0 %1120  ;;  %v953_v19 = vsel %vm952_vm6, %v951_v29, %v946_v51 }
 0x314   :  { %v1175_v33 = vrot.slane %v1121_v42, %v957_v47  ;;  %v960_v18 = vsel %vm959_vm7, %v958_v36, %v953_v19 }
 0x315   :  { %v967_v43 = vsel %vm966_vm8, %v965_v50, %v960_v18 }
 0x317   :  { %v1112_v39 = vpop.permute.xlu1 %1111  ;;  %v1127_v60 = vpop.permute.xlu0 %1126 }
 0x318   :  { %v1161_v45 = vrot.slane %v1112_v39, %v2255_v0  ;;  %v1185_v20 = vrot.slane %v1127_v60, %v971_v57 }
 0x31a   :  { %v1166_v37 = vsel %vm945_vm0, %v1165_v59, %v1161_v45  ;;  %v979_v45 = vrot.slane %v2232_v17, %v978_v15  ;;  %v986_v59 = vrot.slane %v2234_v26, %v985_v41  ;;  %v1034_v26 = vsub.s32 %v1031_v27, %v2247_v55 }
 0x31b   :  { %v1118_v8 = vpop.permute.xlu1 %1117  ;;  %v2267_v44 = vpop.permute.xlu0 %1132 }
 0x31c   :  { %v1170_v30 = vrot.slane %v1118_v8, %v2263_v22  ;;  %v1195_v2 = vrot.slane %v2267_v44, %v985_v41  ;;  %v1027_v8 = vsub.s32 %v1024_v56, %v2247_v55 }
 0x31e   :  { %v1171_v14 = vsel %vm952_vm6, %v1170_v30, %v1166_v37  ;;  %v993_v30 = vrot.slane %v2236_v31, %v992_v5  ;;  %v1038_v37 = vadd.s32 4294967176, %v2521_v54  ;;  %v1028_v41 = vrot.slane %v2249_v6, %v1027_v8 }
 0x31f   :  { %v1124_v48 = vpop.permute.xlu1 %1123  ;;  %v2278_v38 = vpop.permute.xlu0 %1138  ;;  %v1176_v25 = vsel %vm959_vm7, %v1175_v33, %v1171_v14 }
 0x320   :  { %v1180_v13 = vrot.slane %v1124_v48, %v964_v28  ;;  %v1205_v47 = vrot.slane %v2278_v38, %v999_v63  ;;  %v974_v28 = vsel %vm973_vm9, %v972_v40, %v967_v43  ;;  %v1014_v38 = vrot.slane %v2242_v7, %v1013_v10 }
 0x321   :  { %v981_v14 = vsel %vm980_vm10, %v979_v45, %v974_v28  ;;  %v1041_v4 = vsub.s32 %v1038_v37, %v2247_v55 }
 0x322   :  { %v1181_v46 = vsel %vm966_vm8, %v1180_v13, %v1176_v25  ;;  %v988_v48 = vsel %vm987_vm11, %v986_v59, %v981_v14 }
 0x323   :  { %v1130_v58 = vpop.permute.xlu1 %1129  ;;  %v1145_v53 = vpop.permute.xlu0 %1144  ;;  %v1186_v23 = vsel %vm973_vm9, %v1185_v20, %v1181_v46  ;;  %v995_v13 = vsel %vm994_vm1, %v993_v30, %v988_v48 }
 0x324   :  { %v1190_v3 = vrot.slane %v1130_v58, %v978_v15  ;;  %v1215_v33 = vrot.slane %v1145_v53, %v1013_v10  ;;  %v1002_v15 = vsel %vm1001_vm12, %v1000_v24, %v995_v13 }
 0x326   :  { %v1191_v42 = vsel %vm980_vm10, %v1190_v3, %v1186_v23 }
 0x327   :  { %v1136_v39 = vpop.permute.xlu1 %1135  ;;  %v1148_v60 = vpop.permute.xlu0 %1147  ;;  %v1196_v22 = vsel %vm987_vm11, %v1195_v2, %v1191_v42 }
 0x328   :  { %v1200_v0 = vrot.slane %v1136_v39, %v992_v5  ;;  %v1220_v11 = vrot.slane %v1148_v60, %v1020_v16  ;;  %v1009_v5 = vsel %vm1008_vm13, %v1007_v21, %v1002_v15 }
 0x329   :  { %v1016_v61 = vsel %vm1015_vm14, %v1014_v38, %v1009_v5 }
 0x32a   :  { %v1201_v44 = vsel %vm994_vm1, %v1200_v0, %v1196_v22  ;;  %v1023_v55 = vsel %vm1022_vm15, %v1021_v62, %v1016_v61 }
 0x32b   :  { %v1142_v12 = vpop.permute.xlu1 %1141  ;;  %v1151_v17 = vpop.permute.xlu0 %1150  ;;  %v1206_v31 = vsel %vm1001_vm12, %v1205_v47, %v1201_v44  ;;  %v1030_v6 = vsel %vm1029_vm2, %v1028_v41, %v1023_v55 }
 0x32c   :  { %v1210_v1 = vrot.slane %v1142_v12, %v1006_v9  ;;  %v1225_v7 = vrot.slane %v1151_v17, %v1027_v8 }
 0x32e   :  { %v1211_v54 = vsel %vm1008_vm13, %v1210_v1, %v1206_v31 }
 0x32f   :  { %v1216_v57 = vsel %vm1015_vm14, %v1215_v33, %v1211_v54  ;;  %v932_v34 = vpop.permute.xlu1 %931  ;;  %v1154_v25 = vpop.permute.xlu0 %1153 }
 0x330   :  { %v1221_v46 = vsel %vm1022_vm15, %v1220_v11, %v1216_v57  ;;  %v1035_v52 = vrot.slane %v932_v34, %v1034_v26  ;;  %v1230_v20 = vrot.slane %v1154_v25, %v1034_v26 }
 0x331   :  { %v1226_v58 = vsel %vm1029_vm2, %v1225_v7, %v1221_v46 }
 0x332   :  { %v1037_v29 = vsel %vm1036_vm3, %v1035_v52, %v1030_v6  ;;  %v1231_v9 = vsel %vm1036_vm3, %v1230_v20, %v1226_v58 }
 0x333   :  { %v935_v53 = vpop.permute.xlu1 %934  ;;  %v1157_v32 = vpop.permute.xlu0 %1156 }
 0x334   :  { %v1042_v63 = vrot.slane %v935_v53, %v1041_v4  ;;  %v1235_v3 = vrot.slane %v1157_v32, %v1041_v4 }
 0x336   :  { %v1044_v49 = vsel %vm1043_vm4, %v1042_v63, %v1037_v29  ;;  %v1236_v23 = vsel %vm1043_vm4, %v1235_v3, %v1231_v9 }
 0x337   :  { %1045 = vst [vmem:[#allocation8] sm:$0x1] %v1044_v49  ;;  %1238 = vst [vmem:[#allocation9] sm:$0x1] %v1236_v23 }
 0x338   :  { %1407 = shalt.err (!%p1404_p12)
}
 0x339   :  { %s1408_s3 = scalar_lea.hbm %s2372_s1, 16 }
 0x33a   :  { %p1409_p13 = scmp.ne.s32.totalorder %s2372_s1, %s1408_s3  ;;  %p1412_p0 = scmp.lt.u32.totalorder %s1408_s3, %s2372_s1 }
 0x33c   :  { %p1414_p1 = pnand %p1412_p0, %p1409_p13 }
 0x33e   :  { %1417 = shalt.err (!%p1414_p1)
}
 0x33f   :  { %1248 = dma.vmem_to_hbm [thread:$0]  %s1246_s24, 16, %s2372_s1, [#allocation7]  }
 0x340   :  { %s1418_s10 = scalar_lea.vmem %s2339_s26, 16  ;;  %s1422_s11 = scalar_lea.vmem %s2339_s26, 32 }
 0x341   :  { %p1419_p2 = scmp.ne.s32.totalorder %s2339_s26, %s1418_s10  ;;  %p1423_p3 = scmp.lt.s32.totalorder %s2339_s26, %s2339_s26 }
 0x342   :  { %p1424_p4 = scmp.lt.s32.totalorder %s1422_s11, %s1418_s10 }
 0x344   :  { %p1425_p5 = por %p1424_p4, %p1423_p3 }
 0x346   :  { %p1426_p6 = pnand %p1425_p5, %p1419_p2 }
 0x348   :  { %1429 = shalt.err (!%p1426_p6)
}
 0x349   :  { %s1430_s14 = scalar_lea.hbm %s2373_s2, 16 }
 0x34a   :  { %p1431_p7 = scmp.ne.s32.totalorder %s2373_s2, %s1430_s14  ;;  %p1434_p8 = scmp.lt.u32.totalorder %s1430_s14, %s2373_s2 }
 0x34c   :  { %p1436_p9 = pnand %p1434_p8, %p1431_p7 }
 0x34e   :  { %1439 = shalt.err (!%p1436_p9)
}
 0x34f   :  { %1258 = dma.vmem_to_hbm [thread:$0]  %s2339_s26, 16, %s2373_s2, [#allocation10]  }
 0x350   :  { %1442 = dma.done.wait [#allocation7], 16  }
 0x351   :  { %1443 = vsyncadd [#allocation7], 4294967280 }
 0x352   :  { %1444 = dma.done.wait [#allocation10], 16  }
 0x353   :  { %1445 = vsyncadd [#allocation10], 4294967280 }
 0x354   :  { %1265 = vsyncpa [#allocation6], 1 }
 0x355   :  { %1266 = vsyncpa [#allocation7], 1 }
 0x356   :  { %1267 = vsyncpa [#allocation10], 1 }

</bundles_post_ra>
